<compile_context>
chip_gen: v7x
topology: tpu7x:2x2x1
jax: 0.10.0
libtpu: 0.0.40
codegen_flags: <defaults>
</compile_context>

<pallas_src>
import jax
import jax.numpy as jnp
from jax.experimental import pallas as pl
from jax.experimental.pallas import tpu as pltpu

# TODO(synk): `genre_indices` is undefined in the PyTorch source; assuming 10 genres.
NUM_GENRES = 10

D_IN, D_H1, D_H2, D_OUT = 128, 1024, 512, NUM_GENRES
D_OUT_PAD = 128  # lane-dense padded output width (unmasked vst)


def _round_up(n, m):
    return ((n + m - 1) // m) * m


def _act_dtype_for_device():
    """bf16 activation math on v6e/v7x (bf16 EUP); f32 on v5e (no bf16 EUP/VPU)."""
    try:
        kind = jax.devices()[0].device_kind.lower()
    except Exception:
        kind = ""
    return jnp.float32 if "v5" in kind else jnp.bfloat16


def _choose_tb(B, tb):
    # Keep tb a multiple of 16 (bf16 sublane packing) and no larger than needed.
    tb = _round_up(min(max(tb, 16), _round_up(B, 16)), 16)
    # v7x megacore: for large batches make sure the grid has >= 2 steps so the
    # "parallel" batch axis can shard across both TensorCores.
    if B >= 512 and pl.cdiv(B, tb) < 2:
        tb = _round_up(pl.cdiv(B, 2), 16)
    return tb


def _make_kernel(act_dtype):
    def mlp_kernel(x_ref, w1_ref, b1_ref, w2_ref, b2_ref, w3_ref, b3_ref, o_ref):
        def sigmoid_f32(z):
            # exp on the EUP (bf16-rate where supported) + approx reciprocal
            # (vrcp, also EUP) -> no f32 divide / Newton iteration on the VALU.
            e = jnp.exp(-(z.astype(act_dtype)))
            return pl.reciprocal(e.astype(jnp.float32) + 1.0, approx=True)

        # In-kernel cast of the f32 input tile to bf16 for the MXU.
        x = x_ref[...].astype(jnp.bfloat16)

        # Layer 1: (tb, 128) @ (128, 1024), bf16 in / f32 accumulate.
        z1 = jnp.dot(x, w1_ref[...], preferred_element_type=jnp.float32) + b1_ref[...]
        h1 = sigmoid_f32(z1).astype(jnp.bfloat16)

        # Layer 2: (tb, 1024) @ (1024, 512).
        z2 = jnp.dot(h1, w2_ref[...], preferred_element_type=jnp.float32) + b2_ref[...]
        h2 = sigmoid_f32(z2).astype(jnp.bfloat16)

        # Layer 3: (tb, 512) @ (512, 128) with the 10-wide output lane-padded to 128.
        z3 = jnp.dot(h2, w3_ref[...], preferred_element_type=jnp.float32) + b3_ref[...]
        o_ref[...] = sigmoid_f32(z3).astype(o_ref.dtype)

    return mlp_kernel


def prepare_params(params):
    """One-time device-side preparation: bf16 weights, f32 biases, lane-padded layer 3."""
    w1, b1, w2, b2, w3, b3 = params
    b1 = jnp.reshape(b1, (1, D_H1)).astype(jnp.float32)
    b2 = jnp.reshape(b2, (1, D_H2)).astype(jnp.float32)
    w3p = jnp.pad(w3, ((0, 0), (0, D_OUT_PAD - w3.shape[1]))).astype(jnp.bfloat16)
    b3p = jnp.pad(jnp.reshape(b3, (1, -1)),
                  ((0, 0), (0, D_OUT_PAD - b3.shape[-1]))).astype(jnp.float32)
    return (w1.astype(jnp.bfloat16), b1,
            w2.astype(jnp.bfloat16), b2,
            w3p, b3p)


def genre_classifier_forward(x, prepared_params, *, tb=1024):
    """x: [B, 128] float32, prepared_params from prepare_params().
    Returns [B, NUM_GENRES] float32."""
    w1, b1, w2, b2, w3, b3 = prepared_params
    B = x.shape[0]
    act_dtype = _act_dtype_for_device()
    tb = _choose_tb(B, tb)
    grid = (pl.cdiv(B, tb),)

    # Weights / biases: constant index maps -> DMA'd once, resident in VMEM.
    def const_block(shape):
        return pl.BlockSpec(shape, lambda i: (0, 0))

    out = pl.pallas_call(
        _make_kernel(act_dtype),
        out_shape=jax.ShapeDtypeStruct((B, D_OUT_PAD), jnp.float32),
        grid_spec=pltpu.PrefetchScalarGridSpec(
            num_scalar_prefetch=0,
            grid=grid,
            in_specs=[
                pl.BlockSpec((tb, D_IN), lambda i: (i, 0)),  # x tile (f32)
                const_block((D_IN, D_H1)),                   # w1 (bf16)
                const_block((1, D_H1)),                      # b1 (f32)
                const_block((D_H1, D_H2)),                   # w2 (bf16)
                const_block((1, D_H2)),                      # b2 (f32)
                const_block((D_H2, D_OUT_PAD)),              # w3 padded (bf16)
                const_block((1, D_OUT_PAD)),                 # b3 padded (f32)
            ],
            out_specs=pl.BlockSpec((tb, D_OUT_PAD), lambda i: (i, 0)),
        ),
        compiler_params=pltpu.CompilerParams(
            dimension_semantics=("parallel",),
            vmem_limit_bytes=32 * 1024 * 1024,
        ),
    )(x, w1, b1, w2, b2, w3, b3)

    # Drop the lane padding of the final layer (10 real genres).
    return out[:, :D_OUT]


def init_params(key):
    """Deterministic init mimicking nn.Linear default (U[-1/sqrt(fan_in), +])."""
    ks = jax.random.split(key, 6)

    def linear(kw, kb, fan_in, fan_out):
        bound = 1.0 / jnp.sqrt(float(fan_in))
        w = jax.random.uniform(kw, (fan_in, fan_out), jnp.float32, -bound, bound)
        b = jax.random.uniform(kb, (1, fan_out), jnp.float32, -bound, bound)
        return w, b

    w1, b1 = linear(ks[0], ks[1], D_IN, D_H1)
    w2, b2 = linear(ks[2], ks[3], D_H1, D_H2)
    w3, b3 = linear(ks[4], ks[5], D_H2, D_OUT)
    return (w1, b1, w2, b2, w3, b3)


def reference_forward(x, params):
    w1, b1, w2, b2, w3, b3 = params
    h = jax.nn.sigmoid(x @ w1 + b1)
    h = jax.nn.sigmoid(h @ w2 + b2)
    return jax.nn.sigmoid(h @ w3 + b3)


if __name__ == "__main__":
    key = jax.random.PRNGKey(0)
    kp, kx = jax.random.split(key)
    params = init_params(kp)
    prepared = prepare_params(params)   # one-time weight cast / pad

    B = 16
    x = jax.random.normal(kx, (B, D_IN), jnp.float32)

    fwd = jax.jit(genre_classifier_forward, static_argnames=("tb",))
    out = jax.block_until_ready(fwd(x, prepared))

    ref = reference_forward(x, params)
    assert out.shape == (B, NUM_GENRES)
    # bf16 matmuls / bf16 exp / approx reciprocal vs f32 reference -> loosened
    # tolerance (intentional accuracy trade-off; outputs are in [0, 1]).
    assert jnp.allclose(out, ref, atol=2e-2, rtol=2e-2), \
        float(jnp.max(jnp.abs(out - ref)))

    print("KERNEL_OK")
</pallas_src>

<mosaic_0001>
module attributes {stable_mosaic.version = 11 : i64} {
  func.func @mlp_kernel(%arg0: i32, %arg1: memref<16x128xf32, #tpu.memory_space<vmem>>, %arg2: memref<128x1024xbf16, #tpu.memory_space<vmem>>, %arg3: memref<1x1024xf32, #tpu.memory_space<vmem>>, %arg4: memref<1024x512xbf16, #tpu.memory_space<vmem>>, %arg5: memref<1x512xf32, #tpu.memory_space<vmem>>, %arg6: memref<512x128xbf16, #tpu.memory_space<vmem>>, %arg7: memref<1x128xf32, #tpu.memory_space<vmem>>, %arg8: memref<16x128xf32, #tpu.memory_space<vmem>>) attributes {dimension_semantics = [#tpu.dimension_semantics<parallel>], iteration_bounds = array<i64: 1>, scalar_prefetch = 0 : i64, scratch_operands = 0 : i64, tpu.core_type = #tpu.core_type<tc>, window_params = [{transform_indices = @transform_0, window_bounds = array<i64: 16, 128>}, {pipeline_mode = #tpu.pipeline_mode<synchronous>, transform_indices = @transform_1, window_bounds = array<i64: 128, 1024>}, {pipeline_mode = #tpu.pipeline_mode<synchronous>, transform_indices = @transform_2, window_bounds = array<i64: 1, 1024>}, {pipeline_mode = #tpu.pipeline_mode<synchronous>, transform_indices = @transform_3, window_bounds = array<i64: 1024, 512>}, {pipeline_mode = #tpu.pipeline_mode<synchronous>, transform_indices = @transform_4, window_bounds = array<i64: 1, 512>}, {pipeline_mode = #tpu.pipeline_mode<synchronous>, transform_indices = @transform_5, window_bounds = array<i64: 512, 128>}, {pipeline_mode = #tpu.pipeline_mode<synchronous>, transform_indices = @transform_6, window_bounds = array<i64: 1, 128>}, {transform_indices = @transform_7, window_bounds = array<i64: 16, 128>}]} {
    %c0 = arith.constant 0 : index
    %c0_0 = arith.constant 0 : index
    %0 = vector.load %arg1[%c0, %c0_0] : memref<16x128xf32, #tpu.memory_space<vmem>>, vector<16x128xf32>
    %1 = arith.truncf %0 : vector<16x128xf32> to vector<16x128xbf16>
    %c0_1 = arith.constant 0 : index
    %c0_2 = arith.constant 0 : index
    %2 = vector.load %arg2[%c0_1, %c0_2] : memref<128x1024xbf16, #tpu.memory_space<vmem>>, vector<128x1024xbf16>
    %cst = arith.constant dense<0.000000e+00> : vector<16x1024xf32>
    %3 = tpu.matmul %1, %2, %cst {dimension_numbers = #tpu.dot_dimension_numbers<[1], [0], [0], [1], [0, 0, 1, 1], [], []>} : vector<16x128xbf16>, vector<128x1024xbf16>, vector<16x1024xf32> -> vector<16x1024xf32>
    %c0_3 = arith.constant 0 : index
    %c0_4 = arith.constant 0 : index
    %4 = vector.load %arg3[%c0_3, %c0_4] : memref<1x1024xf32, #tpu.memory_space<vmem>>, vector<1x1024xf32>
    %5 = vector.broadcast %4 : vector<1x1024xf32> to vector<16x1024xf32>
    %6 = arith.addf %3, %5 : vector<16x1024xf32>
    %7 = arith.truncf %6 : vector<16x1024xf32> to vector<16x1024xbf16>
    %cst_5 = arith.constant 0.000000e+00 : bf16
    %8 = vector.broadcast %cst_5 : bf16 to vector<16x1024xbf16>
    %9 = arith.subf %8, %7 : vector<16x1024xbf16>
    %10 = math.exp %9 : vector<16x1024xbf16>
    %11 = arith.extf %10 : vector<16x1024xbf16> to vector<16x1024xf32>
    %cst_6 = arith.constant 1.000000e+00 : f32
    %12 = vector.broadcast %cst_6 : f32 to vector<16x1024xf32>
    %13 = arith.addf %11, %12 : vector<16x1024xf32>
    %14 = tpu.reciprocal %13 {approx = true} : vector<16x1024xf32> -> vector<16x1024xf32>
    %15 = arith.truncf %14 : vector<16x1024xf32> to vector<16x1024xbf16>
    %c0_7 = arith.constant 0 : index
    %c0_8 = arith.constant 0 : index
    %16 = vector.load %arg4[%c0_7, %c0_8] : memref<1024x512xbf16, #tpu.memory_space<vmem>>, vector<1024x512xbf16>
    %cst_9 = arith.constant dense<0.000000e+00> : vector<16x512xf32>
    %17 = tpu.matmul %15, %16, %cst_9 {dimension_numbers = #tpu.dot_dimension_numbers<[1], [0], [0], [1], [0, 0, 1, 1], [], []>} : vector<16x1024xbf16>, vector<1024x512xbf16>, vector<16x512xf32> -> vector<16x512xf32>
    %c0_10 = arith.constant 0 : index
    %c0_11 = arith.constant 0 : index
    %18 = vector.load %arg5[%c0_10, %c0_11] : memref<1x512xf32, #tpu.memory_space<vmem>>, vector<1x512xf32>
    %19 = vector.broadcast %18 : vector<1x512xf32> to vector<16x512xf32>
    %20 = arith.addf %17, %19 : vector<16x512xf32>
    %21 = arith.truncf %20 : vector<16x512xf32> to vector<16x512xbf16>
    %cst_12 = arith.constant 0.000000e+00 : bf16
    %22 = vector.broadcast %cst_12 : bf16 to vector<16x512xbf16>
    %23 = arith.subf %22, %21 : vector<16x512xbf16>
    %24 = math.exp %23 : vector<16x512xbf16>
    %25 = arith.extf %24 : vector<16x512xbf16> to vector<16x512xf32>
    %cst_13 = arith.constant 1.000000e+00 : f32
    %26 = vector.broadcast %cst_13 : f32 to vector<16x512xf32>
    %27 = arith.addf %25, %26 : vector<16x512xf32>
    %28 = tpu.reciprocal %27 {approx = true} : vector<16x512xf32> -> vector<16x512xf32>
    %29 = arith.truncf %28 : vector<16x512xf32> to vector<16x512xbf16>
    %c0_14 = arith.constant 0 : index
    %c0_15 = arith.constant 0 : index
    %30 = vector.load %arg6[%c0_14, %c0_15] : memref<512x128xbf16, #tpu.memory_space<vmem>>, vector<512x128xbf16>
    %cst_16 = arith.constant dense<0.000000e+00> : vector<16x128xf32>
    %31 = tpu.matmul %29, %30, %cst_16 {dimension_numbers = #tpu.dot_dimension_numbers<[1], [0], [0], [1], [0, 0, 1, 1], [], []>} : vector<16x512xbf16>, vector<512x128xbf16>, vector<16x128xf32> -> vector<16x128xf32>
    %c0_17 = arith.constant 0 : index
    %c0_18 = arith.constant 0 : index
    %32 = vector.load %arg7[%c0_17, %c0_18] : memref<1x128xf32, #tpu.memory_space<vmem>>, vector<1x128xf32>
    %33 = vector.broadcast %32 : vector<1x128xf32> to vector<16x128xf32>
    %34 = arith.addf %31, %33 : vector<16x128xf32>
    %35 = arith.truncf %34 : vector<16x128xf32> to vector<16x128xbf16>
    %cst_19 = arith.constant 0.000000e+00 : bf16
    %36 = vector.broadcast %cst_19 : bf16 to vector<16x128xbf16>
    %37 = arith.subf %36, %35 : vector<16x128xbf16>
    %38 = math.exp %37 : vector<16x128xbf16>
    %39 = arith.extf %38 : vector<16x128xbf16> to vector<16x128xf32>
    %cst_20 = arith.constant 1.000000e+00 : f32
    %40 = vector.broadcast %cst_20 : f32 to vector<16x128xf32>
    %41 = arith.addf %39, %40 : vector<16x128xf32>
    %42 = tpu.reciprocal %41 {approx = true} : vector<16x128xf32> -> vector<16x128xf32>
    %c0_21 = arith.constant 0 : index
    %c0_22 = arith.constant 0 : index
    %43 = vector.load %arg8[%c0_21, %c0_22] : memref<16x128xf32, #tpu.memory_space<vmem>>, vector<16x128xf32>
    tpu.vector_store %arg8[%c0_21, %c0_22], %42 {strides = array<i32>} : memref<16x128xf32, #tpu.memory_space<vmem>>, vector<16x128xf32>,
    return
  }
  func.func @transform_0(%arg0: i32) -> (i32, i32) {
    %c0_i32 = arith.constant 0 : i32
    %c0_i32_0 = arith.constant 0 : i32
    return %arg0, %c0_i32 : i32, i32
  }
  func.func @transform_1(%arg0: i32) -> (i32, i32) {
    %c0_i32 = arith.constant 0 : i32
    %c0_i32_0 = arith.constant 0 : i32
    %c0_i32_1 = arith.constant 0 : i32
    return %c0_i32, %c0_i32_0 : i32, i32
  }
  func.func @transform_2(%arg0: i32) -> (i32, i32) {
    %c0_i32 = arith.constant 0 : i32
    %c0_i32_0 = arith.constant 0 : i32
    %c0_i32_1 = arith.constant 0 : i32
    return %c0_i32, %c0_i32_0 : i32, i32
  }
  func.func @transform_3(%arg0: i32) -> (i32, i32) {
    %c0_i32 = arith.constant 0 : i32
    %c0_i32_0 = arith.constant 0 : i32
    %c0_i32_1 = arith.constant 0 : i32
    return %c0_i32, %c0_i32_0 : i32, i32
  }
  func.func @transform_4(%arg0: i32) -> (i32, i32) {
    %c0_i32 = arith.constant 0 : i32
    %c0_i32_0 = arith.constant 0 : i32
    %c0_i32_1 = arith.constant 0 : i32
    return %c0_i32, %c0_i32_0 : i32, i32
  }
  func.func @transform_5(%arg0: i32) -> (i32, i32) {
    %c0_i32 = arith.constant 0 : i32
    %c0_i32_0 = arith.constant 0 : i32
    %c0_i32_1 = arith.constant 0 : i32
    return %c0_i32, %c0_i32_0 : i32, i32
  }
  func.func @transform_6(%arg0: i32) -> (i32, i32) {
    %c0_i32 = arith.constant 0 : i32
    %c0_i32_0 = arith.constant 0 : i32
    %c0_i32_1 = arith.constant 0 : i32
    return %c0_i32, %c0_i32_0 : i32, i32
  }
  func.func @transform_7(%arg0: i32) -> (i32, i32) {
    %c0_i32 = arith.constant 0 : i32
    %c0_i32_0 = arith.constant 0 : i32
    return %arg0, %c0_i32 : i32, i32
  }
}

</mosaic_0001>

<bundles_post_ra>
// kernel: genre_classifier_forward.1
= control target key start
LH: loop header
LB: loop body
LE: loop exit
PB: predicated region body
PF: predicated region fallthrough
CT: control target
= control target key end

     0   :  { %12 = vsyncpa [#allocation3], 0  ;;  %s4423_s0 = inlined_call_operand.hbm [shape: f32[16,128], index: 0, kind: input, shape index: {}]   ;;  %s4424_s1 = inlined_call_operand.hbm [shape: bf16[128,1024], index: 1, kind: input, shape index: {}]   ;;  %s4425_s2 = inlined_call_operand.hbm [shape: f32[1,1024], index: 2, kind: input, shape index: {}]   ;;  %s4426_s3 = inlined_call_operand.hbm [shape: bf16[1024,512], index: 3, kind: input, shape index: {}]   ;;  %s4427_s4 = inlined_call_operand.vmem [shape: f32[1,512], index: 4, kind: input, shape index: {}]   ;;  %s4428_s5 = inlined_call_operand.hbm [shape: bf16[512,128], index: 5, kind: input, shape index: {}]   ;;  %s4429_s6 = inlined_call_operand.vmem [shape: f32[1,128], index: 6, kind: input, shape index: {}]   ;;  %s4430_s7 = inlined_call_operand.hbm [shape: f32[16,128], index: 7, kind: output, shape index: {}]  }
   0x1   :  { %13 = vsyncpa [#allocation6], 0 }
   0x2   :  { %14 = vsyncpa [#allocation9], 0 }
   0x3   :  { %15 = vsyncpa [#allocation4], 0  ;;  %s4196_s24 = smov [#allocation5]   ;;  %s4056_s28 = scalar_lea.hbm %s4424_s1, 8192 }
   0x4   :  { %s33_s25 = sshll.u32 %s4196_s24, 4  ;;  %p4057_p0 = scmp.ne.s32.totalorder %s4424_s1, %s4056_s28  ;;  %s34_s25 = int_to_ptr.vmem [resolvable:$true] %s33_s25 }
   0x5   :  { %p4060_p1 = scmp.lt.u32.totalorder %s4056_s28, %s4424_s1 }
   0x7   :  { %p4062_p2 = pnand %p4060_p1, %p4057_p0 }
   0x9   :  { %4065 = shalt.err (!%p4062_p2)
}
   0xa   :  { %s4066_s10 = scalar_lea.vmem %s34_s25, 8192  ;;  %p4071_p4 = scmp.lt.s32.totalorder %s34_s25, %s34_s25 }
   0xb   :  { %p4067_p3 = scmp.ne.s32.totalorder %s34_s25, %s4066_s10  ;;  %p4072_p5 = scmp.lt.s32.totalorder %s4066_s10, %s4066_s10 }
   0xd   :  { %p4073_p6 = por %p4072_p5, %p4071_p4 }
   0xf   :  { %p4074_p7 = pnand %p4073_p6, %p4067_p3 }
  0x11   :  { %4077 = shalt.err (!%p4074_p7)
}
  0x12   :  { %s4197_s11 = smov 512   ;;  %s4198_s12 = smov 32  }
  0x13   :  { %39 = dma.hbm_to_vmem [thread:$0]  %s4424_s1, 8192, %s34_s25, [#allocation6], %s4197_s11, %s4197_s11, %s4198_s12  }
  0x14   :  { %s4199_s15 = smov [#allocation8]   ;;  %s4078_s19 = scalar_lea.hbm %s4426_s3, 32768 }
  0x15   :  { %s55_s16 = sshll.u32 %s4199_s15, 4  ;;  %p4079_p8 = scmp.ne.s32.totalorder %s4426_s3, %s4078_s19  ;;  %s56_s16 = int_to_ptr.vmem [resolvable:$true] %s55_s16 }
  0x16   :  { %p4082_p9 = scmp.lt.u32.totalorder %s4078_s19, %s4426_s3 }
  0x18   :  { %p4084_p10 = pnand %p4082_p9, %p4079_p8 }
  0x1a   :  { %4087 = shalt.err (!%p4084_p10)
}
  0x1b   :  { %s4088_s24 = scalar_lea.vmem %s56_s16, 32768  ;;  %p4093_p12 = scmp.lt.s32.totalorder %s56_s16, %s56_s16 }
  0x1c   :  { %p4089_p11 = scmp.ne.s32.totalorder %s56_s16, %s4088_s24  ;;  %p4094_p13 = scmp.lt.s32.totalorder %s4088_s24, %s4088_s24 }
  0x1e   :  { %p4095_p0 = por %p4094_p13, %p4093_p12 }
  0x20   :  { %p4096_p1 = pnand %p4095_p0, %p4089_p11 }
  0x22   :  { %4099 = shalt.err (!%p4096_p1)
}
  0x23   :  { %s4200_s1 = smov 256   ;;  %s4201_s25 = smov 16  }
  0x24   :  { %61 = dma.hbm_to_vmem [thread:$0]  %s4426_s3, 32768, %s56_s16, [#allocation9], %s4200_s1, %s4200_s1, %s4201_s25  }
  0x25   :  { %s4202_s28 = smov [#allocation2]   ;;  %s4100_s9 = scalar_lea.hbm %s4423_s0, 256 }
  0x26   :  { %s21_s29 = sshll.u32 %s4202_s28, 4  ;;  %p4101_p2 = scmp.ne.s32.totalorder %s4423_s0, %s4100_s9  ;;  %s22_s29 = int_to_ptr.vmem [resolvable:$true] %s21_s29 }
  0x27   :  { %p4104_p3 = scmp.lt.u32.totalorder %s4100_s9, %s4423_s0 }
  0x29   :  { %p4106_p4 = pnand %p4104_p3, %p4101_p2 }
  0x2b   :  { %4109 = shalt.err (!%p4106_p4)
}
  0x2c   :  { %s4110_s14 = scalar_lea.vmem %s22_s29, 256  ;;  %p4115_p6 = scmp.lt.s32.totalorder %s22_s29, %s22_s29 }
  0x2d   :  { %p4111_p5 = scmp.ne.s32.totalorder %s22_s29, %s4110_s14  ;;  %p4116_p7 = scmp.lt.s32.totalorder %s4110_s14, %s4110_s14 }
  0x2f   :  { %p4117_p8 = por %p4116_p7, %p4115_p6 }
  0x31   :  { %p4118_p9 = pnand %p4117_p8, %p4111_p5 }
  0x33   :  { %4121 = shalt.err (!%p4118_p9)
}
  0x34   :  { %s4203_s3 = smov 128   ;;  %s4204_s15 = smov 8  }
  0x35   :  { %27 = dma.hbm_to_vmem [thread:$0]  %s4423_s0, 256, %s22_s29, [#allocation3], %s4203_s3, %s4203_s3, %s4204_s15  }
  0x36   :  { %s4205_s18 = smov [#allocation7]   ;;  %s4206_s20 = smov [#allocation10]  }
  0x37   :  { %s46_s19 = sshll.u32 %s4205_s18, 4  ;;  %s69_s21 = sshll.u32 %s4206_s20, 4  ;;  %s47_s19 = int_to_ptr.vmem [resolvable:$true] %s46_s19  ;;  %s70_s21 = int_to_ptr.vmem [resolvable:$true] %s69_s21 }
  0x38   :  { %s4122_s24 = scalar_lea.hbm %s4425_s2, 128 }
  0x39   :  { %p4123_p10 = scmp.ne.s32.totalorder %s4425_s2, %s4122_s24  ;;  %p4126_p11 = scmp.lt.u32.totalorder %s4122_s24, %s4425_s2 }
  0x3b   :  { %p4128_p12 = pnand %p4126_p11, %p4123_p10 }
  0x3d   :  { %4131 = shalt.err (!%p4128_p12)
}
  0x3e   :  { %s4132_s0 = scalar_lea.vmem %s47_s19, 128  ;;  %p4137_p0 = scmp.lt.s32.totalorder %s47_s19, %s47_s19 }
  0x3f   :  { %p4133_p13 = scmp.ne.s32.totalorder %s47_s19, %s4132_s0  ;;  %p4138_p1 = scmp.lt.s32.totalorder %s4132_s0, %s4132_s0 }
  0x41   :  { %p4139_p2 = por %p4138_p1, %p4137_p0 }
  0x43   :  { %p4140_p3 = pnand %p4139_p2, %p4133_p13 }
  0x45   :  { %4143 = shalt.err (!%p4140_p3)
}
  0x46   :  { %49 = dma.hbm_to_vmem [thread:$0]  %s4425_s2, 128, %s47_s19, [#allocation6]  }
  0x47   :  { %s4144_s9 = scalar_lea.hbm %s4428_s5, 4096 }
  0x48   :  { %p4145_p4 = scmp.ne.s32.totalorder %s4428_s5, %s4144_s9  ;;  %p4148_p5 = scmp.lt.u32.totalorder %s4144_s9, %s4428_s5 }
  0x4a   :  { %p4150_p6 = pnand %p4148_p5, %p4145_p4 }
  0x4c   :  { %4153 = shalt.err (!%p4150_p6)
}
  0x4d   :  { %s4154_s14 = scalar_lea.vmem %s70_s21, 4096  ;;  %p4159_p8 = scmp.lt.s32.totalorder %s70_s21, %s70_s21 }
  0x4e   :  { %p4155_p7 = scmp.ne.s32.totalorder %s70_s21, %s4154_s14  ;;  %p4160_p9 = scmp.lt.s32.totalorder %s4154_s14, %s4154_s14 }
  0x50   :  { %p4161_p10 = por %p4160_p9, %p4159_p8 }
  0x52   :  { %p4162_p11 = pnand %p4161_p10, %p4155_p7 }
  0x54   :  { %4165 = shalt.err (!%p4162_p11)
}
  0x55   :  { %s4207_s2 = smov 64   ;;  %s4208_s16 = smov 4  }
  0x56   :  { %75 = dma.hbm_to_vmem [thread:$0]  %s4428_s5, 4096, %s70_s21, [#allocation9], %s4207_s2, %s4207_s2, %s4208_s16  }
  0x57   :  { %4188 = dma.done.wait [#allocation3], 256  }
  0x58   :  { %4189 = vsyncadd [#allocation3], 4294967040 }
  0x59   :  { %4190 = dma.done.wait [#allocation6], 8320  }
  0x5a   :  { %4191 = vsyncadd [#allocation6], 4294958976 }
  0x5b   :  { %4192 = dma.done.wait [#allocation9], 36864  }
  0x5c   :  { %4193 = vsyncadd [#allocation9], 4294930432  ;;  %v4209_v0 = vmov 0   ;;  %v97_v1 = vld [vmem:[#allocation5] sm:$0xff]  ;;  %v98_v14 = vld [vmem:[#allocation5 + $0x8] sm:$0xff] }
  0x5d   :  { %555 = vmatprep.mubr.bf16.mxu0 %v4209_v0  ;;  %598 = vmatprep.mubr.bf16.mxu1 %v4209_v0  ;;  %v101_v2 = vld [vmem:[#allocation5 + $0x20] sm:$0xff]  ;;  %v102_v15 = vld [vmem:[#allocation5 + $0x28] sm:$0xff]  ;;  %v99_v57 = vld [vmem:[#allocation5 + $0x10] sm:$0xff] }
  0x5e   :  { %v105_v3 = vld [vmem:[#allocation5 + $0x40] sm:$0xff]  ;;  %v3119_v4 = vcombine.high %v97_v1, %v101_v2  ;;  %v3118_v5 = vcombine.low %v97_v1, %v101_v2  ;;  %v106_v16 = vld [vmem:[#allocation5 + $0x48] sm:$0xff]  ;;  %v3121_v17 = vcombine.high %v98_v14, %v102_v15  ;;  %v3120_v18 = vcombine.low %v98_v14, %v102_v15  ;;  %v94_v58 = vld [vmem:[#allocation2] sm:$0xff] }
  0x5f   :  { %v109_v6 = vld [vmem:[#allocation5 + $0x60] sm:$0xff]  ;;  %v110_v19 = vld [vmem:[#allocation5 + $0x68] sm:$0xff]  ;;  %v103_v60 = vld [vmem:[#allocation5 + $0x30] sm:$0xff] }
  0x60   :  { %v3127_v7 = vcombine.high %v105_v3, %v109_v6  ;;  %v113_v8 = vld [vmem:[#allocation5 + $0x80] sm:$0xff]  ;;  %523 = vmatprep.subr.bf16.mxu0 %v3119_v4  ;;  %v3126_v10 = vcombine.low %v105_v3, %v109_v6  ;;  %v3129_v21 = vcombine.high %v106_v16, %v110_v19  ;;  %v114_v22 = vld [vmem:[#allocation5 + $0x88] sm:$0xff]  ;;  %566 = vmatprep.subr.bf16.mxu1 %v3121_v17  ;;  %v95_v61 = vld [vmem:[#allocation2 + $0x8] sm:$0xff] }
  0x61   :  { %v117_v9 = vld [vmem:[#allocation5 + $0xa0] sm:$0xff]  ;;  %524 = vmatpush1.bf16.msra.mxu0 %v3118_v5  ;;  %v118_v23 = vld [vmem:[#allocation5 + $0xa8] sm:$0xff]  ;;  %567 = vmatpush1.bf16.msra.mxu1 %v3120_v18  ;;  %v3128_v27 = vcombine.low %v106_v16, %v110_v19  ;;  %v3123_v3 = vcombine.high %v99_v57, %v103_v60  ;;  %v107_v4 = vld [vmem:[#allocation5 + $0x50] sm:$0xff] }
  0x62   :  { %525 = vmatprep.subr.bf16.mxu0 %v3127_v7  ;;  %v3135_v11 = vcombine.high %v113_v8, %v117_v9  ;;  %v121_v12 = vld [vmem:[#allocation5 + $0xc0] sm:$0xff]  ;;  %v3134_v20 = vcombine.low %v113_v8, %v117_v9  ;;  %568 = vmatprep.subr.bf16.mxu1 %v3129_v21  ;;  %v3137_v28 = vcombine.high %v114_v22, %v118_v23  ;;  %v122_v30 = vld [vmem:[#allocation5 + $0xc8] sm:$0xff]  ;;  %v111_v6 = vld [vmem:[#allocation5 + $0x70] sm:$0xff] }
  0x63   :  { %v125_v13 = vld [vmem:[#allocation5 + $0xe0] sm:$0xff]  ;;  %v126_v31 = vld [vmem:[#allocation5 + $0xe8] sm:$0xff]  ;;  %v3136_v35 = vcombine.low %v114_v22, %v118_v23  ;;  %v4316_v7 = vpack.c.bf16 %v95_v61, %v94_v58  ;;  %v3122_v9 = vcombine.low %v99_v57, %v103_v60  ;;  %v119_v15 = vld [vmem:[#allocation5 + $0xb0] sm:$0xff]  ;;  %v3130_v17 = vcombine.low %v107_v4, %v111_v6 }
  0x64   :  { %v3143_v24 = vcombine.high %v121_v12, %v125_v13  ;;  %v129_v25 = vld [vmem:[#allocation5 + $0x100] sm:$0xff]  ;;  %v3142_v29 = vcombine.low %v121_v12, %v125_v13  ;;  %v3145_v36 = vcombine.high %v122_v30, %v126_v31  ;;  %v130_v38 = vld [vmem:[#allocation5 + $0x108] sm:$0xff]  ;;  %v3144_v43 = vcombine.low %v122_v30, %v126_v31  ;;  %v115_v13 = vld [vmem:[#allocation5 + $0x90] sm:$0xff] }
  0x65   :  { %526 = vmatpush1.bf16.msra.mxu0 %v3126_v10  ;;  %v133_v26 = vld [vmem:[#allocation5 + $0x120] sm:$0xff]  ;;  %569 = vmatpush1.bf16.msra.mxu1 %v3128_v27  ;;  %v134_v39 = vld [vmem:[#allocation5 + $0x128] sm:$0xff]  ;;  %v100_v10 = vld [vmem:[#allocation5 + $0x18] sm:$0xff]  ;;  %v3131_v12 = vcombine.high %v107_v4, %v111_v6  ;;  %v3138_v27 = vcombine.low %v115_v13, %v119_v15 }
  0x66   :  { %527 = vmatprep.subr.bf16.mxu0 %v3135_v11  ;;  %v3151_v32 = vcombine.high %v129_v25, %v133_v26  ;;  %v137_v33 = vld [vmem:[#allocation5 + $0x140] sm:$0xff]  ;;  %570 = vmatprep.subr.bf16.mxu1 %v3137_v28  ;;  %v3150_v37 = vcombine.low %v129_v25, %v133_v26  ;;  %v3153_v44 = vcombine.high %v130_v38, %v134_v39  ;;  %v138_v46 = vld [vmem:[#allocation5 + $0x148] sm:$0xff]  ;;  %v104_v11 = vld [vmem:[#allocation5 + $0x38] sm:$0xff] }
  0x67   :  { %v141_v34 = vld [vmem:[#allocation5 + $0x160] sm:$0xff]  ;;  %v142_v47 = vld [vmem:[#allocation5 + $0x168] sm:$0xff]  ;;  %v3152_v51 = vcombine.low %v130_v38, %v134_v39  ;;  %v3125_v16 = vcombine.high %v100_v10, %v104_v11  ;;  %v108_v18 = vld [vmem:[#allocation5 + $0x58] sm:$0xff]  ;;  %v3124_v23 = vcombine.low %v100_v10, %v104_v11 }
  0x68   :  { %v3159_v40 = vcombine.high %v137_v33, %v141_v34  ;;  %v145_v41 = vld [vmem:[#allocation5 + $0x180] sm:$0xff]  ;;  %v3158_v45 = vcombine.low %v137_v33, %v141_v34  ;;  %v3161_v52 = vcombine.high %v138_v46, %v142_v47  ;;  %v146_v54 = vld [vmem:[#allocation5 + $0x188] sm:$0xff]  ;;  %v3160_v59 = vcombine.low %v138_v46, %v142_v47  ;;  %v112_v19 = vld [vmem:[#allocation5 + $0x78] sm:$0xff] }
  0x69   :  { %528 = vmatpush1.bf16.msra.mxu0 %v3134_v20  ;;  %v149_v42 = vld [vmem:[#allocation5 + $0x1a0] sm:$0xff]  ;;  %571 = vmatpush1.bf16.msra.mxu1 %v3136_v35  ;;  %v150_v55 = vld [vmem:[#allocation5 + $0x1a8] sm:$0xff]  ;;  %v3139_v20 = vcombine.high %v115_v13, %v119_v15  ;;  %v123_v21 = vld [vmem:[#allocation5 + $0xd0] sm:$0xff]  ;;  %v3133_v26 = vcombine.high %v108_v18, %v112_v19  ;;  %v3132_v31 = vcombine.low %v108_v18, %v112_v19 }
  0x6a   :  { %529 = vmatprep.subr.bf16.mxu0 %v3143_v24  ;;  %572 = vmatprep.subr.bf16.mxu1 %v3145_v36  ;;  %v3167_v48 = vcombine.high %v145_v41, %v149_v42  ;;  %v153_v49 = vld [vmem:[#allocation5 + $0x1c0] sm:$0xff]  ;;  %v3166_v53 = vcombine.low %v145_v41, %v149_v42  ;;  %v3169_v62 = vcombine.high %v146_v54, %v150_v55  ;;  %v154_v1 = vld [vmem:[#allocation5 + $0x1c8] sm:$0xff]  ;;  %v127_v22 = vld [vmem:[#allocation5 + $0xf0] sm:$0xff] }
  0x6b   :  { %v157_v50 = vld [vmem:[#allocation5 + $0x1e0] sm:$0xff]  ;;  %v158_v2 = vld [vmem:[#allocation5 + $0x1e8] sm:$0xff]  ;;  %v3168_v5 = vcombine.low %v146_v54, %v150_v55  ;;  %v116_v24 = vld [vmem:[#allocation5 + $0x98] sm:$0xff]  ;;  %v3147_v30 = vcombine.high %v123_v21, %v127_v22  ;;  %v3146_v35 = vcombine.low %v123_v21, %v127_v22 }
  0x6c   :  { %v3175_v56 = vcombine.high %v153_v49, %v157_v50  ;;  %v3174_v63 = vcombine.low %v153_v49, %v157_v50  ;;  %v3177_v8 = vcombine.high %v154_v1, %v158_v2  ;;  %v3176_v14 = vcombine.low %v154_v1, %v158_v2  ;;  %v120_v25 = vld [vmem:[#allocation5 + $0xb8] sm:$0xff]  ;;  %v131_v28 = vld [vmem:[#allocation5 + $0x110] sm:$0xff] }
  0x6d   :  { %530 = vmatpush1.bf16.msra.mxu0 %v3142_v29  ;;  %573 = vmatpush1.bf16.msra.mxu1 %v3144_v43  ;;  %v135_v29 = vld [vmem:[#allocation5 + $0x130] sm:$0xff]  ;;  %v128_v33 = vld [vmem:[#allocation5 + $0xf8] sm:$0xff]  ;;  %v3141_v34 = vcombine.high %v116_v24, %v120_v25  ;;  %v3140_v39 = vcombine.low %v116_v24, %v120_v25 }
  0x6e   :  { %531 = vmatprep.subr.bf16.mxu0 %v3151_v32  ;;  %574 = vmatprep.subr.bf16.mxu1 %v3153_v44  ;;  %v124_v32 = vld [vmem:[#allocation5 + $0xd8] sm:$0xff]  ;;  %v139_v36 = vld [vmem:[#allocation5 + $0x150] sm:$0xff]  ;;  %v3155_v38 = vcombine.high %v131_v28, %v135_v29  ;;  %v3154_v43 = vcombine.low %v131_v28, %v135_v29 }
  0x6f   :  { %v136_v41 = vld [vmem:[#allocation5 + $0x138] sm:$0xff]  ;;  %v3149_v42 = vcombine.high %v124_v32, %v128_v33  ;;  %v147_v44 = vld [vmem:[#allocation5 + $0x190] sm:$0xff]  ;;  %v3148_v46 = vcombine.low %v124_v32, %v128_v33 }
  0x70   :  { %v140_v47 = vld [vmem:[#allocation5 + $0x158] sm:$0xff]  ;;  %v3573_v13 = vld [vmem:[#allocation8 + $0x2c] ss:$16 sps:$4 sm:$0xff]   ;;  %v3583_v24 = vld [vmem:[#allocation8 + $0x68] ss:$16 sps:$4 sm:$0xff]  }
  0x71   :  { %532 = vmatpush1.bf16.msra.mxu0 %v3150_v37  ;;  %575 = vmatpush1.bf16.msra.mxu1 %v3152_v51  ;;  %v143_v37 = vld [vmem:[#allocation5 + $0x170] sm:$0xff]  ;;  %v148_v55 = vld [vmem:[#allocation5 + $0x198] sm:$0xff] }
  0x72   :  { %533 = vmatprep.subr.bf16.mxu0 %v3159_v40  ;;  %576 = vmatprep.subr.bf16.mxu1 %v3161_v52  ;;  %v132_v40 = vld [vmem:[#allocation5 + $0x118] sm:$0xff]  ;;  %v3162_v50 = vcombine.low %v139_v36, %v143_v37  ;;  %v155_v51 = vld [vmem:[#allocation5 + $0x1d0] sm:$0xff] }
  0x73   :  { %v3157_v49 = vcombine.high %v132_v40, %v136_v41  ;;  %v159_v52 = vld [vmem:[#allocation5 + $0x1f0] sm:$0xff]  ;;  %v3156_v54 = vcombine.low %v132_v40, %v136_v41  ;;  %v156_v61 = vld [vmem:[#allocation5 + $0x1d8] sm:$0xff] }
  0x74   :  { %v3564_v1 = vld [vmem:[#allocation8 + $0x4] ss:$16 sps:$4 sm:$0xff]   ;;  %v3178_v2 = vcombine.low %v155_v51, %v159_v52  ;;  %v3562_v4 = vld [vmem:[#allocation8] ss:$16 sps:$4 sm:$0xff]   ;;  %v3585_v21 = vld [vmem:[#allocation8 + $0x6c] ss:$16 sps:$4 sm:$0xff]  }
  0x75   :  { %534 = vmatpush1.bf16.msra.mxu0 %v3158_v45  ;;  %577 = vmatpush1.bf16.msra.mxu1 %v3160_v59  ;;  %v151_v45 = vld [vmem:[#allocation5 + $0x1b0] sm:$0xff]  ;;  %v3179_v59 = vcombine.high %v155_v51, %v159_v52  ;;  %v3570_v6 = vld [vmem:[#allocation8 + $0x24] ss:$16 sps:$4 sm:$0xff]   ;;  %v3568_v10 = vld [vmem:[#allocation8 + $0x20] ss:$16 sps:$4 sm:$0xff]  }
  0x76   :  { %535 = vmatprep.subr.bf16.mxu0 %v3167_v48  ;;  %578 = vmatprep.subr.bf16.mxu1 %v3169_v62  ;;  %v144_v48 = vld [vmem:[#allocation5 + $0x178] sm:$0xff]  ;;  %v3170_v58 = vcombine.low %v147_v44, %v151_v45  ;;  %v3591_v25 = vld [vmem:[#allocation8 + $0x8c] ss:$16 sps:$4 sm:$0xff]   ;;  %v3595_v28 = vld [vmem:[#allocation8 + $0xa8] ss:$16 sps:$4 sm:$0xff]  }
  0x77   :  { %v3165_v57 = vcombine.high %v140_v47, %v144_v48  ;;  %v3164_v60 = vcombine.low %v140_v47, %v144_v48  ;;  %v160_v62 = vld [vmem:[#allocation5 + $0x1f8] sm:$0xff]  ;;  %v3601_v32 = vld [vmem:[#allocation8 + $0xc8] ss:$16 sps:$4 sm:$0xff]  }
  0x78   :  { %v3576_v11 = vld [vmem:[#allocation8 + $0x44] ss:$16 sps:$4 sm:$0xff]   ;;  %v3580_v18 = vld [vmem:[#allocation8 + $0x60] ss:$16 sps:$4 sm:$0xff]   ;;  %v3613_v40 = vld [vmem:[#allocation8 + $0x108] ss:$16 sps:$4 sm:$0xff]  }
  0x79   :  { %536 = vmatpush1.bf16.msra.mxu0 %v3166_v53  ;;  %579 = vmatpush1.bf16.msra.mxu1 %v3168_v5  ;;  %v3171_v53 = vcombine.high %v147_v44, %v151_v45  ;;  %v3181_v5 = vcombine.high %v156_v61, %v160_v62  ;;  %v3582_v15 = vld [vmem:[#allocation8 + $0x64] ss:$16 sps:$4 sm:$0xff]   ;;  %v3586_v22 = vld [vmem:[#allocation8 + $0x80] ss:$16 sps:$4 sm:$0xff]   ;;  %v3619_v44 = vld [vmem:[#allocation8 + $0x128] ss:$16 sps:$4 sm:$0xff]  }
  0x7a   :  { %537 = vmatprep.subr.bf16.mxu0 %v3175_v56  ;;  %580 = vmatprep.subr.bf16.mxu1 %v3177_v8  ;;  %v152_v56 = vld [vmem:[#allocation5 + $0x1b8] sm:$0xff]  ;;  %v3567_v8 = vld [vmem:[#allocation8 + $0xc] ss:$16 sps:$4 sm:$0xff]   ;;  %v3625_v47 = vld [vmem:[#allocation8 + $0x148] ss:$16 sps:$4 sm:$0xff]  }
  0x7b   :  { %v3588_v19 = vld [vmem:[#allocation8 + $0x84] ss:$16 sps:$4 sm:$0xff]   ;;  %v3631_v51 = vld [vmem:[#allocation8 + $0x168] ss:$16 sps:$4 sm:$0xff]  }
  0x7c   :  { %v3600_v29 = vld [vmem:[#allocation8 + $0xc4] ss:$16 sps:$4 sm:$0xff]  }
  0x7d   :  { %538 = vmatpush1.bf16.msra.mxu0 %v3174_v63  ;;  %581 = vmatpush1.bf16.msra.mxu1 %v3176_v14  ;;  %v3173_v63 = vcombine.high %v148_v55, %v152_v56  ;;  %v3574_v14 = vld [vmem:[#allocation8 + $0x40] ss:$16 sps:$4 sm:$0xff]   ;;  %v3606_v33 = vld [vmem:[#allocation8 + $0xe4] ss:$16 sps:$4 sm:$0xff]  }
  0x7e   :  { %609 = vmatprep.subr.bf16.mxu0 %v3123_v3  ;;  %652 = vmatprep.subr.bf16.mxu1 %v3125_v16  ;;  %v3172_v3 = vcombine.low %v148_v55, %v152_v56  ;;  %v3571_v16 = vld [vmem:[#allocation8 + $0x28] ss:$16 sps:$4 sm:$0xff]   ;;  %v3618_v41 = vld [vmem:[#allocation8 + $0x124] ss:$16 sps:$4 sm:$0xff]   ;;  %v3640_v56 = vld [vmem:[#allocation8 + $0x1a0] ss:$16 sps:$4 sm:$0xff]  }
  0x7f   :  { %v3624_v45 = vld [vmem:[#allocation8 + $0x144] ss:$16 sps:$4 sm:$0xff]   ;;  %v3637_v55 = vld [vmem:[#allocation8 + $0x188] ss:$16 sps:$4 sm:$0xff]  }
  0x80   :  { %556 = vmatmul.mubr.bf16.vlgmr.msra.gmra.mrb[0].mxu0 %v4316_v7  ;;  %599 = vmatmul.mubr.bf16.vlgmr.msra.gmra.mrb[0].mxu1 %v4316_v7  ;;  %v3630_v48 = vld [vmem:[#allocation8 + $0x164] ss:$16 sps:$4 sm:$0xff]  }
  0x81   :  { %610 = vmatpush1.bf16.msra.mxu0 %v3122_v9  ;;  %641 = vmatprep.mubr.bf16.mxu0 %v4209_v0  ;;  %v3180_v9 = vcombine.low %v156_v61, %v160_v62  ;;  %v3636_v52 = vld [vmem:[#allocation8 + $0x184] ss:$16 sps:$4 sm:$0xff]   ;;  %v3651_v61 = vld [vmem:[#allocation8 + $0x1cc] ss:$16 sps:$4 sm:$0xff]   ;;  %v3646_v62 = vld [vmem:[#allocation8 + $0x1c0] ss:$16 sps:$4 sm:$0xff]  }
  0x82   :  { %611 = vmatprep.subr.bf16.mxu0 %v3131_v12  ;;  %653 = vmatpush1.bf16.msra.mxu1 %v3124_v23  ;;  %v3565_v12 = vld [vmem:[#allocation8 + $0x8] ss:$16 sps:$4 sm:$0xff]   ;;  %v3594_v23 = vld [vmem:[#allocation8 + $0xa4] ss:$16 sps:$4 sm:$0xff]  }
  0x83   :  { %684 = vmatprep.mubr.bf16.mxu1 %v4209_v0  ;;  %654 = vmatprep.subr.bf16.mxu1 %v3133_v26  ;;  %v3163_v0 = vcombine.high %v139_v36, %v143_v37  ;;  %v3589_v26 = vld [vmem:[#allocation8 + $0x88] ss:$16 sps:$4 sm:$0xff]   ;;  %v3612_v37 = vld [vmem:[#allocation8 + $0x104] ss:$16 sps:$4 sm:$0xff]  }
  0x84   :  { %v3607_v36 = vld [vmem:[#allocation8 + $0xe8] ss:$16 sps:$4 sm:$0xff]  }
  0x85   :  { %612 = vmatpush1.bf16.msra.mxu0 %v3130_v17  ;;  %v3579_v17 = vld [vmem:[#allocation8 + $0x4c] ss:$16 sps:$4 sm:$0xff]  }
  0x86   :  { %613 = vmatprep.subr.bf16.mxu0 %v3139_v20  ;;  %655 = vmatpush1.bf16.msra.mxu1 %v3132_v31  ;;  %v3577_v20 = vld [vmem:[#allocation8 + $0x48] ss:$16 sps:$4 sm:$0xff]   ;;  %v3598_v31 = vld [vmem:[#allocation8 + $0xc0] ss:$16 sps:$4 sm:$0xff]  }
  0x87   :  { %656 = vmatprep.subr.bf16.mxu1 %v3141_v34  ;;  %v3609_v34 = vld [vmem:[#allocation8 + $0xec] ss:$16 sps:$4 sm:$0xff]  }
  0x89   :  { %614 = vmatpush1.bf16.msra.mxu0 %v3138_v27  ;;  %v3597_v27 = vld [vmem:[#allocation8 + $0xac] ss:$16 sps:$4 sm:$0xff]  }
  0x8a   :  { %615 = vmatprep.subr.bf16.mxu0 %v3147_v30  ;;  %657 = vmatpush1.bf16.msra.mxu1 %v3140_v39  ;;  %v3603_v30 = vld [vmem:[#allocation8 + $0xcc] ss:$16 sps:$4 sm:$0xff]   ;;  %v3610_v39 = vld [vmem:[#allocation8 + $0x100] ss:$16 sps:$4 sm:$0xff]  }
  0x8b   :  { %658 = vmatprep.subr.bf16.mxu1 %v3149_v42  ;;  %v3621_v42 = vld [vmem:[#allocation8 + $0x12c] ss:$16 sps:$4 sm:$0xff]  }
  0x8d   :  { %616 = vmatpush1.bf16.msra.mxu0 %v3146_v35  ;;  %v3604_v35 = vld [vmem:[#allocation8 + $0xe0] ss:$16 sps:$4 sm:$0xff]  }
  0x8e   :  { %617 = vmatprep.subr.bf16.mxu0 %v3155_v38  ;;  %659 = vmatpush1.bf16.msra.mxu1 %v3148_v46  ;;  %v3615_v38 = vld [vmem:[#allocation8 + $0x10c] ss:$16 sps:$4 sm:$0xff]   ;;  %v3622_v46 = vld [vmem:[#allocation8 + $0x140] ss:$16 sps:$4 sm:$0xff]  }
  0x8f   :  { %660 = vmatprep.subr.bf16.mxu1 %v3157_v49  ;;  %v3633_v49 = vld [vmem:[#allocation8 + $0x16c] ss:$16 sps:$4 sm:$0xff]  }
  0x91   :  { %618 = vmatpush1.bf16.msra.mxu0 %v3154_v43  ;;  %v3616_v43 = vld [vmem:[#allocation8 + $0x120] ss:$16 sps:$4 sm:$0xff]  }
  0x92   :  { %619 = vmatprep.subr.bf16.mxu0 %v3163_v0  ;;  %661 = vmatpush1.bf16.msra.mxu1 %v3156_v54  ;;  %v3627_v0 = vld [vmem:[#allocation8 + $0x14c] ss:$16 sps:$4 sm:$0xff]   ;;  %v3634_v54 = vld [vmem:[#allocation8 + $0x180] ss:$16 sps:$4 sm:$0xff]  }
  0x93   :  { %662 = vmatprep.subr.bf16.mxu1 %v3165_v57  ;;  %v3642_v57 = vld [vmem:[#allocation8 + $0x1a4] ss:$16 sps:$4 sm:$0xff]  }
  0x95   :  { %620 = vmatpush1.bf16.msra.mxu0 %v3162_v50  ;;  %v3628_v50 = vld [vmem:[#allocation8 + $0x160] ss:$16 sps:$4 sm:$0xff]  }
  0x96   :  { %621 = vmatprep.subr.bf16.mxu0 %v3171_v53  ;;  %663 = vmatpush1.bf16.msra.mxu1 %v3164_v60  ;;  %v3639_v53 = vld [vmem:[#allocation8 + $0x18c] ss:$16 sps:$4 sm:$0xff]   ;;  %v3648_v60 = vld [vmem:[#allocation8 + $0x1c4] ss:$16 sps:$4 sm:$0xff]  }
  0x97   :  { %664 = vmatprep.subr.bf16.mxu1 %v3173_v63  ;;  %v3649_v63 = vld [vmem:[#allocation8 + $0x1c8] ss:$16 sps:$4 sm:$0xff]  }
  0x99   :  { %622 = vmatpush1.bf16.msra.mxu0 %v3170_v58  ;;  %v3643_v58 = vld [vmem:[#allocation8 + $0x1a8] ss:$16 sps:$4 sm:$0xff]  }
  0x9a   :  { %623 = vmatprep.subr.bf16.mxu0 %v3179_v59  ;;  %665 = vmatpush1.bf16.msra.mxu1 %v3172_v3  ;;  %v3645_v59 = vld [vmem:[#allocation8 + $0x1ac] ss:$16 sps:$4 sm:$0xff]   ;;  %v3652_v3 = vld [vmem:[#allocation8 + $0x1e0] ss:$16 sps:$4 sm:$0xff]  }
  0x9b   :  { %666 = vmatprep.subr.bf16.mxu1 %v3181_v5  ;;  %v3660_v5 = vld [vmem:[#allocation8 + $0x204] ss:$16 sps:$4 sm:$0xff]  }
  0x9d   :  { %624 = vmatpush1.bf16.msra.mxu0 %v3178_v2  ;;  %v3657_v2 = vld [vmem:[#allocation8 + $0x1ec] ss:$16 sps:$4 sm:$0xff]  }
  0x9e   :  { %2349 = vmatprep.subr.bf16.mxu0 %v3564_v1  ;;  %667 = vmatpush1.bf16.msra.mxu1 %v3180_v9  ;;  %v3654_v1 = vld [vmem:[#allocation8 + $0x1e4] ss:$16 sps:$4 sm:$0xff]  }
  0x9f   :  { %2521 = vmatprep.subr.bf16.mxu1 %v3567_v8  ;;  %v163_v8 = vlaneseq }
  0xa0   :  { %642 = vmatmul.mubr.bf16.vlgmr.msra.gmra.mrb[4].mxu0 %v4316_v7 }
  0xa1   :  { %2350 = vmatpush1.bf16.msra.mxu0 %v3562_v4  ;;  %685 = vmatmul.mubr.bf16.vlgmr.msra.gmra.mrb[4].mxu1 %v4316_v7  ;;  %v3592_v7 = vld [vmem:[#allocation8 + $0xa0] ss:$16 sps:$4 sm:$0xff]   ;;  %v3655_v4 = vld [vmem:[#allocation8 + $0x1e8] ss:$16 sps:$4 sm:$0xff]   ;;  %v4324_v9 = vshrl.u32 %v163_v8, 7 }
  0xa2   :  { %2351 = vmatprep.subr.bf16.mxu0 %v3570_v6  ;;  %2522 = vmatpush1.bf16.msra.mxu1 %v3565_v12  ;;  %v3663_v6 = vld [vmem:[#allocation8 + $0x20c] ss:$16 sps:$4 sm:$0xff]  }
  0xa3   :  { %2523 = vmatprep.subr.bf16.mxu1 %v3573_v13  ;;  %v169_v12 = vsub.s32 1, %v4324_v9 }
  0xa5   :  { %2352 = vmatpush1.bf16.msra.mxu0 %v3568_v10  ;;  %v165_v10 = vsub.s32 0, %v4324_v9 }
  0xa6   :  { %2353 = vmatprep.subr.bf16.mxu0 %v3576_v11  ;;  %2524 = vmatpush1.bf16.msra.mxu1 %v3571_v16  ;;  %v4327_v11 = vld [vmem:[#allocation7] sm:$0xff] }
  0xa7   :  { %2525 = vmatprep.subr.bf16.mxu1 %v3579_v17  ;;  %v166_v13 = vrot.slane %v4327_v11, %v165_v10  ;;  %v170_v16 = vrot.slane %v4327_v11, %v169_v12  ;;  %v177_v17 = vsub.s32 3, %v4324_v9 }
  0xa9   :  { %2354 = vmatpush1.bf16.msra.mxu0 %v3574_v14  ;;  %v173_v14 = vsub.s32 2, %v4324_v9 }
  0xaa   :  { %2355 = vmatprep.subr.bf16.mxu0 %v3582_v15  ;;  %2526 = vmatpush1.bf16.msra.mxu1 %v3577_v20 }
  0xab   :  { %2527 = vmatprep.subr.bf16.mxu1 %v3585_v21 }
  0xad   :  { %2356 = vmatpush1.bf16.msra.mxu0 %v3580_v18 }
  0xae   :  { %2357 = vmatprep.subr.bf16.mxu0 %v3588_v19  ;;  %2528 = vmatpush1.bf16.msra.mxu1 %v3583_v24 }
  0xaf   :  { %2529 = vmatprep.subr.bf16.mxu1 %v3591_v25 }
  0xb1   :  { %2358 = vmatpush1.bf16.msra.mxu0 %v3586_v22 }
  0xb2   :  { %2359 = vmatprep.subr.bf16.mxu0 %v3594_v23  ;;  %2530 = vmatpush1.bf16.msra.mxu1 %v3589_v26  ;;  %v174_v23 = vrot.slane %v4327_v11, %v173_v14 }
  0xb3   :  { %2531 = vmatprep.subr.bf16.mxu1 %v3597_v27 }
  0xb5   :  { %2360 = vmatpush1.bf16.msra.mxu0 %v3592_v7  ;;  %v178_v7 = vrot.slane %v4327_v11, %v177_v17 }
  0xb6   :  { %2532 = vmatpush1.bf16.msra.mxu1 %v3595_v28  ;;  %2361 = vmatprep.subr.bf16.mxu0 %v3600_v29 }
  0xb7   :  { %2533 = vmatprep.subr.bf16.mxu1 %v3603_v30 }
  0xb9   :  { %2362 = vmatpush1.bf16.msra.mxu0 %v3598_v31 }
  0xba   :  { %2534 = vmatpush1.bf16.msra.mxu1 %v3601_v32  ;;  %2363 = vmatprep.subr.bf16.mxu0 %v3606_v33 }
  0xbb   :  { %2535 = vmatprep.subr.bf16.mxu1 %v3609_v34 }
  0xbd   :  { %2364 = vmatpush1.bf16.msra.mxu0 %v3604_v35 }
  0xbe   :  { %2536 = vmatpush1.bf16.msra.mxu1 %v3607_v36  ;;  %2365 = vmatprep.subr.bf16.mxu0 %v3612_v37 }
  0xbf   :  { %2537 = vmatprep.subr.bf16.mxu1 %v3615_v38 }
  0xc1   :  { %2366 = vmatpush1.bf16.msra.mxu0 %v3610_v39 }
  0xc2   :  { %2538 = vmatpush1.bf16.msra.mxu1 %v3613_v40  ;;  %2367 = vmatprep.subr.bf16.mxu0 %v3618_v41 }
  0xc3   :  { %2539 = vmatprep.subr.bf16.mxu1 %v3621_v42 }
  0xc5   :  { %2368 = vmatpush1.bf16.msra.mxu0 %v3616_v43 }
  0xc6   :  { %2540 = vmatpush1.bf16.msra.mxu1 %v3619_v44  ;;  %2369 = vmatprep.subr.bf16.mxu0 %v3624_v45 }
  0xc7   :  { %2541 = vmatprep.subr.bf16.mxu1 %v3627_v0 }
  0xc9   :  { %2370 = vmatpush1.bf16.msra.mxu0 %v3622_v46 }
  0xca   :  { %2542 = vmatpush1.bf16.msra.mxu1 %v3625_v47  ;;  %2371 = vmatprep.subr.bf16.mxu0 %v3630_v48 }
  0xcb   :  { %2543 = vmatprep.subr.bf16.mxu1 %v3633_v49 }
  0xcd   :  { %2372 = vmatpush1.bf16.msra.mxu0 %v3628_v50 }
  0xce   :  { %2544 = vmatpush1.bf16.msra.mxu1 %v3631_v51  ;;  %2373 = vmatprep.subr.bf16.mxu0 %v3636_v52  ;;  %v181_v51 = vsub.s32 4, %v4324_v9 }
  0xcf   :  { %2545 = vmatprep.subr.bf16.mxu1 %v3639_v53 }
  0xd1   :  { %2374 = vmatpush1.bf16.msra.mxu0 %v3634_v54  ;;  %v185_v54 = vsub.s32 5, %v4324_v9 }
  0xd2   :  { %2546 = vmatpush1.bf16.msra.mxu1 %v3637_v55  ;;  %2375 = vmatprep.subr.bf16.mxu0 %v3642_v57 }
  0xd3   :  { %2547 = vmatprep.subr.bf16.mxu1 %v3645_v59  ;;  %v186_v59 = vrot.slane %v4327_v11, %v185_v54 }
  0xd5   :  { %2376 = vmatpush1.bf16.msra.mxu0 %v3640_v56  ;;  %v182_v56 = vrot.slane %v4327_v11, %v181_v51  ;;  %v193_v51 = vsub.s32 7, %v4324_v9 }
  0xd6   :  { %2548 = vmatpush1.bf16.msra.mxu1 %v3643_v58  ;;  %2377 = vmatprep.subr.bf16.mxu0 %v3648_v60 }
  0xd7   :  { %2549 = vmatprep.subr.bf16.mxu1 %v3651_v61 }
  0xd9   :  { %2378 = vmatpush1.bf16.msra.mxu0 %v3646_v62 }
  0xda   :  { %2550 = vmatpush1.bf16.msra.mxu1 %v3649_v63  ;;  %2379 = vmatprep.subr.bf16.mxu0 %v3654_v1 }
  0xdb   :  { %2551 = vmatprep.subr.bf16.mxu1 %v3657_v2 }
  0xdd   :  { %2380 = vmatpush1.bf16.msra.mxu0 %v3652_v3 }
  0xde   :  { %2552 = vmatpush1.bf16.msra.mxu1 %v3655_v4  ;;  %2392 = vmatprep.subr.bf16.mxu0 %v3660_v5 }
  0xdf   :  { %2564 = vmatprep.subr.bf16.mxu1 %v3663_v6 }
 0x153   :  { %v557_v15 = vpop.f32.mrb[0].mxu0  ;;  %v600_v28 = vpop.f32.mrb[0].mxu1 }
 0x154   :  { %v559_v18 = vpop.f32.mrb[1].mxu0  ;;  %v558_v20 = vadd.f32 %v557_v15, %v166_v13  ;;  %v4344_v30 = vadd.f32 %v600_v28, %v174_v23  ;;  %v602_v31 = vpop.f32.mrb[1].mxu1 }
 0x155   :  { %v561_v19 = vpop.f32.mrb[2].mxu0  ;;  %v560_v24 = vadd.f32 %v559_v18, %v170_v16  ;;  %v603_v33 = vadd.f32 %v602_v31, %v178_v7  ;;  %v604_v34 = vpop.f32.mrb[2].mxu1  ;;  %v3675_v31 = vld [vmem:[#allocation8 + $0x24c] ss:$16 sps:$4 sm:$0xff]  }
 0x156   :  { %v562_v21 = vadd.f32 %v561_v19, %v166_v13  ;;  %v563_v22 = vpop.f32.mrb[3].mxu0  ;;  %v4346_v36 = vadd.f32 %v604_v34, %v174_v23  ;;  %v606_v37 = vpop.f32.mrb[3].mxu1  ;;  %v3673_v34 = vld [vmem:[#allocation8 + $0x248] ss:$16 sps:$4 sm:$0xff]  }
 0x157   :  { %v564_v25 = vadd.f32 %v563_v22, %v170_v16  ;;  %v607_v39 = vadd.f32 %v606_v37, %v178_v7  ;;  %v3661_v22 = vld [vmem:[#allocation8 + $0x208] ss:$16 sps:$4 sm:$0xff]   ;;  %v3681_v37 = vld [vmem:[#allocation8 + $0x26c] ss:$16 sps:$4 sm:$0xff]  }
 0x158   :  { %v695_v26 = vpack.c.bf16 %v562_v21, %v558_v20  ;;  %v697_v40 = vpack.c.bf16 %v4346_v36, %v4344_v30  ;;  %v3658_v21 = vld [vmem:[#allocation8 + $0x200] ss:$16 sps:$4 sm:$0xff]   ;;  %v3697_v36 = vld [vmem:[#allocation8 + $0x2c8] ss:$16 sps:$4 sm:$0xff]  }
 0x159   :  { %v696_v27 = vpack.c.bf16 %v564_v25, %v560_v24  ;;  %v698_v41 = vpack.c.bf16 %v607_v39, %v603_v33  ;;  %v3666_v24 = vld [vmem:[#allocation8 + $0x224] ss:$16 sps:$4 sm:$0xff]   ;;  %v3669_v25 = vld [vmem:[#allocation8 + $0x22c] ss:$16 sps:$4 sm:$0xff]   ;;  %v3670_v33 = vld [vmem:[#allocation8 + $0x240] ss:$16 sps:$4 sm:$0xff]  }
 0x15a   :  { %v703_v29 = vsub.bf16 0, %v695_v26  ;;  %v3664_v26 = vld [vmem:[#allocation8 + $0x220] ss:$16 sps:$4 sm:$0xff]   ;;  %v3679_v39 = vld [vmem:[#allocation8 + $0x268] ss:$16 sps:$4 sm:$0xff]  }
 0x15b   :  { %v704_v32 = vsub.bf16 0, %v696_v27  ;;  %v706_v42 = vsub.bf16 0, %v698_v41  ;;  %v3667_v27 = vld [vmem:[#allocation8 + $0x228] ss:$16 sps:$4 sm:$0xff]   ;;  %v3684_v41 = vld [vmem:[#allocation8 + $0x284] ss:$16 sps:$4 sm:$0xff]  }
 0x15c   :  { %v712_v35 = vmul.bf16 1069105081, %v703_v29  ;;  %v3672_v29 = vld [vmem:[#allocation8 + $0x244] ss:$16 sps:$4 sm:$0xff]  }
 0x15d   :  { %v715_v38 = vmul.bf16 1069105081, %v704_v32  ;;  %v721_v43 = vmul.bf16 1069105081, %v706_v42  ;;  %v3687_v42 = vld [vmem:[#allocation8 + $0x28c] ss:$16 sps:$4 sm:$0xff]  }
 0x15e   :  { %3978 = vpow.bf16 %v712_v35  ;;  %v3678_v35 = vld [vmem:[#allocation8 + $0x264] ss:$16 sps:$4 sm:$0xff]  }
 0x15f   :  { %3980 = vpow.bf16 %v715_v38  ;;  %v3676_v38 = vld [vmem:[#allocation8 + $0x260] ss:$16 sps:$4 sm:$0xff]  }
 0x160   :  { %3982 = vpow.bf16 %v721_v43  ;;  %v3682_v43 = vld [vmem:[#allocation8 + $0x280] ss:$16 sps:$4 sm:$0xff]  }
 0x169   :  { %v3979_v44 = vpop.eup %3978 }
 0x16a   :  { %v3981_v45 = vpop.eup %3980  ;;  %v735_v0 = vunpack.c.l.bf16 %v3979_v44  ;;  %v743_v46 = vunpack.c.h.bf16 %v3979_v44  ;;  %v3685_v44 = vld [vmem:[#allocation8 + $0x288] ss:$16 sps:$4 sm:$0xff]  }
 0x16b   :  { %v736_v47 = vunpack.c.l.bf16 %v3981_v45  ;;  %v744_v48 = vunpack.c.h.bf16 %v3981_v45  ;;  %v3983_v55 = vpop.eup %3982  ;;  %v3690_v45 = vld [vmem:[#allocation8 + $0x2a4] ss:$16 sps:$4 sm:$0xff]  }
 0x16c   :  { %v751_v49 = vadd.f32 1.0, %v735_v0  ;;  %v759_v50 = vadd.f32 1.0, %v743_v46  ;;  %v738_v57 = vunpack.c.l.bf16 %v3983_v55  ;;  %v746_v58 = vunpack.c.h.bf16 %v3983_v55  ;;  %v3693_v0 = vld [vmem:[#allocation8 + $0x2ac] ss:$16 sps:$4 sm:$0xff]   ;;  %v3688_v46 = vld [vmem:[#allocation8 + $0x2a0] ss:$16 sps:$4 sm:$0xff]  }
 0x16d   :  { %v752_v52 = vadd.f32 1.0, %v736_v47  ;;  %v760_v53 = vadd.f32 1.0, %v744_v48  ;;  %v3691_v47 = vld [vmem:[#allocation8 + $0x2a8] ss:$16 sps:$4 sm:$0xff]   ;;  %v705_v48 = vsub.bf16 0, %v697_v40 }
 0x16e   :  { %3984 = vrcp.f32 %v751_v49  ;;  %v754_v60 = vadd.f32 1.0, %v738_v57  ;;  %v762_v61 = vadd.f32 1.0, %v746_v58  ;;  %v189_v49 = vsub.s32 6, %v4324_v9 }
 0x16f   :  { %3986 = vrcp.f32 %v759_v50  ;;  %v194_v57 = vrot.slane %v4327_v11, %v193_v51  ;;  %v718_v30 = vmul.bf16 1069105081, %v705_v48  ;;  %v3741_v48 = vld [vmem:[#allocation8 + $0x3ac] ss:$16 sps:$4 sm:$0xff]   ;;  %v3739_v51 = vld [vmem:[#allocation8 + $0x3a8] ss:$16 sps:$4 sm:$0xff]  }
 0x170   :  { %3988 = vrcp.f32 %v752_v52  ;;  %v3696_v52 = vld [vmem:[#allocation8 + $0x2c4] ss:$16 sps:$4 sm:$0xff]  }
 0x171   :  { %3990 = vrcp.f32 %v760_v53  ;;  %v3699_v53 = vld [vmem:[#allocation8 + $0x2cc] ss:$16 sps:$4 sm:$0xff]  }
 0x172   :  { %3992 = vrcp.f32 %v754_v60 }
 0x173   :  { %v643_v62 = vpop.f32.mrb[4].mxu0  ;;  %3994 = vrcp.f32 %v762_v61 }
 0x174   :  { %v4354_v63 = vadd.f32 %v643_v62, %v182_v56  ;;  %v645_v1 = vpop.f32.mrb[5].mxu0  ;;  %v686_v50 = vpop.f32.mrb[4].mxu1  ;;  %3996 = vpow.bf16 %v718_v30  ;;  %v3751_v30 = vld [vmem:[#allocation8 + $0x3e8] ss:$16 sps:$4 sm:$0xff]  }
 0x175   :  { %v4356_v2 = vadd.f32 %v645_v1, %v186_v59  ;;  %v647_v3 = vpop.f32.mrb[6].mxu0  ;;  %v688_v54 = vpop.f32.mrb[5].mxu1  ;;  %v3702_v1 = vld [vmem:[#allocation8 + $0x2e4] ss:$16 sps:$4 sm:$0xff]  }
 0x176   :  { %v4358_v4 = vadd.f32 %v647_v3, %v182_v56  ;;  %v649_v5 = vpop.f32.mrb[7].mxu0  ;;  %v190_v56 = vrot.slane %v4327_v11, %v189_v49  ;;  %v690_v58 = vpop.f32.mrb[6].mxu1  ;;  %v4375_v60 = vadd.f32 %v688_v54, %v194_v57  ;;  %v3742_v54 = vld [vmem:[#allocation8 + $0x3c0] ss:$16 sps:$4 sm:$0xff]  }
 0x177   :  { %v4360_v6 = vadd.f32 %v649_v5, %v186_v59  ;;  %v3694_v59 = vld [vmem:[#allocation8 + $0x2c0] ss:$16 sps:$4 sm:$0xff]   ;;  %v692_v62 = vpop.f32.mrb[7].mxu1 }
 0x178   :  { %v3985_v8 = vpop.eup %3984  ;;  %v699_v13 = vpack.c.bf16 %v4358_v4, %v4354_v63  ;;  %v4373_v40 = vadd.f32 %v686_v50, %v190_v56  ;;  %v4377_v61 = vadd.f32 %v690_v58, %v190_v56  ;;  %v4379_v3 = vadd.f32 %v692_v62, %v194_v57  ;;  %v3736_v50 = vld [vmem:[#allocation8 + $0x3a0] ss:$16 sps:$4 sm:$0xff]   ;;  %v3750_v56 = vld [vmem:[#allocation8 + $0x3e4] ss:$16 sps:$4 sm:$0xff]   ;;  %v3753_v57 = vld [vmem:[#allocation8 + $0x3ec] ss:$16 sps:$4 sm:$0xff]  }
 0x179   :  { %v3987_v15 = vpop.eup %3986  ;;  %v700_v16 = vpack.c.bf16 %v4360_v6, %v4356_v2  ;;  %v3705_v2 = vld [vmem:[#allocation8 + $0x2ec] ss:$16 sps:$4 sm:$0xff]   ;;  %v3756_v62 = vld [vmem:[#allocation8 + $0x404] ss:$16 sps:$4 sm:$0xff]   ;;  %v3796_v63 = vld [vmem:[#allocation8 + $0x4e0] ss:$16 sps:$4 sm:$0xff]  }
 0x17a   :  { %v3989_v18 = vpop.eup %3988  ;;  %v783_v23 = vpack.c.bf16 %v3987_v15, %v3985_v8  ;;  %v701_v5 = vpack.c.bf16 %v4377_v61, %v4373_v40  ;;  %v702_v6 = vpack.c.bf16 %v4379_v3, %v4375_v60  ;;  %v3700_v8 = vld [vmem:[#allocation8 + $0x2e0] ss:$16 sps:$4 sm:$0xff]   ;;  %v3703_v15 = vld [vmem:[#allocation8 + $0x2e8] ss:$16 sps:$4 sm:$0xff]   ;;  %v3807_v60 = vld [vmem:[#allocation8 + $0x50c] ss:$16 sps:$4 sm:$0xff]  }
 0x17b   :  { %v3991_v19 = vpop.eup %3990  ;;  %v708_v55 = vsub.bf16 0, %v700_v16  ;;  %v3708_v16 = vld [vmem:[#allocation8 + $0x304] ss:$16 sps:$4 sm:$0xff]   ;;  %v3799_v4 = vld [vmem:[#allocation8 + $0x4e8] ss:$16 sps:$4 sm:$0xff]  }
 0x17c   :  { %v784_v20 = vpack.c.bf16 %v3991_v19, %v3989_v18  ;;  %v3993_v7 = vpop.eup %3992  ;;  %v3711_v18 = vld [vmem:[#allocation8 + $0x30c] ss:$16 sps:$4 sm:$0xff]   ;;  %v3706_v19 = vld [vmem:[#allocation8 + $0x300] ss:$16 sps:$4 sm:$0xff]   ;;  %v3900_v40 = vld [vmem:[#allocation8 + $0x704] ss:$16 sps:$4 sm:$0xff]  }
 0x17d   :  { %v3995_v28 = vpop.eup %3994  ;;  %v727_v11 = vmul.bf16 1069105081, %v708_v55  ;;  %v3745_v55 = vld [vmem:[#allocation8 + $0x3c8] ss:$16 sps:$4 sm:$0xff]   ;;  %v3802_v3 = vld [vmem:[#allocation8 + $0x500] ss:$16 sps:$4 sm:$0xff]  }
 0x17e   :  { %2381 = vmatprep.mubr.bf16.mxu0 %v784_v20  ;;  %2553 = vmatprep.mubr.bf16.mxu1 %v784_v20  ;;  %v786_v32 = vpack.c.bf16 %v3995_v28, %v3993_v7  ;;  %v3709_v20 = vld [vmem:[#allocation8 + $0x308] ss:$16 sps:$4 sm:$0xff]   ;;  %v3723_v7 = vld [vmem:[#allocation8 + $0x34c] ss:$16 sps:$4 sm:$0xff]  }
 0x17f   :  { %2382 = vmatmul.mubr.bf16.vlgmr.msra.gmra.mrb[8].mxu0 %v783_v23  ;;  %2554 = vmatmul.mubr.bf16.vlgmr.msra.gmra.mrb[8].mxu1 %v783_v23  ;;  %3998 = vpow.bf16 %v727_v11  ;;  %v3712_v23 = vld [vmem:[#allocation8 + $0x320] ss:$16 sps:$4 sm:$0xff]   ;;  %v3721_v28 = vld [vmem:[#allocation8 + $0x348] ss:$16 sps:$4 sm:$0xff]   ;;  %v3903_v61 = vld [vmem:[#allocation8 + $0x70c] ss:$16 sps:$4 sm:$0xff]  }
 0x180   :  { %2393 = vmatpush1.bf16.msra.mxu0 %v3658_v21  ;;  %2565 = vmatpush1.bf16.msra.mxu1 %v3661_v22  ;;  %v3714_v21 = vld [vmem:[#allocation8 + $0x324] ss:$16 sps:$4 sm:$0xff]   ;;  %v3717_v22 = vld [vmem:[#allocation8 + $0x32c] ss:$16 sps:$4 sm:$0xff]  }
 0x181   :  { %2394 = vmatprep.subr.bf16.mxu0 %v3666_v24  ;;  %2566 = vmatprep.subr.bf16.mxu1 %v3669_v25  ;;  %v3715_v24 = vld [vmem:[#allocation8 + $0x328] ss:$16 sps:$4 sm:$0xff]   ;;  %v3720_v25 = vld [vmem:[#allocation8 + $0x344] ss:$16 sps:$4 sm:$0xff]  }
 0x182   :  { %2424 = vmatprep.mubr.bf16.mxu0 %v786_v32  ;;  %2596 = vmatprep.mubr.bf16.mxu1 %v786_v32  ;;  %v3729_v32 = vld [vmem:[#allocation8 + $0x36c] ss:$16 sps:$4 sm:$0xff]  }
 0x184   :  { %2395 = vmatpush1.bf16.msra.mxu0 %v3664_v26  ;;  %2567 = vmatpush1.bf16.msra.mxu1 %v3667_v27  ;;  %v3997_v26 = vpop.eup %3996  ;;  %v3718_v27 = vld [vmem:[#allocation8 + $0x340] ss:$16 sps:$4 sm:$0xff]  }
 0x185   :  { %2396 = vmatprep.subr.bf16.mxu0 %v3672_v29  ;;  %2568 = vmatprep.subr.bf16.mxu1 %v3675_v31  ;;  %v3726_v31 = vld [vmem:[#allocation8 + $0x364] ss:$16 sps:$4 sm:$0xff]  }
 0x188   :  { %2397 = vmatpush1.bf16.msra.mxu0 %v3670_v33  ;;  %2569 = vmatpush1.bf16.msra.mxu1 %v3673_v34  ;;  %v737_v33 = vunpack.c.l.bf16 %v3997_v26  ;;  %v745_v34 = vunpack.c.h.bf16 %v3997_v26  ;;  %v3774_v26 = vld [vmem:[#allocation8 + $0x464] ss:$16 sps:$4 sm:$0xff]  }
 0x189   :  { %2398 = vmatprep.subr.bf16.mxu0 %v3678_v35  ;;  %2570 = vmatprep.subr.bf16.mxu1 %v3681_v37  ;;  %v3724_v35 = vld [vmem:[#allocation8 + $0x360] ss:$16 sps:$4 sm:$0xff]   ;;  %v3727_v37 = vld [vmem:[#allocation8 + $0x368] ss:$16 sps:$4 sm:$0xff]  }
 0x18a   :  { %v3999_v29 = vpop.eup %3998 }
 0x18c   :  { %2399 = vmatpush1.bf16.msra.mxu0 %v3676_v38  ;;  %2571 = vmatpush1.bf16.msra.mxu1 %v3679_v39  ;;  %v740_v38 = vunpack.c.l.bf16 %v3999_v29  ;;  %v3732_v39 = vld [vmem:[#allocation8 + $0x384] ss:$16 sps:$4 sm:$0xff]  }
 0x18d   :  { %2400 = vmatprep.subr.bf16.mxu0 %v3684_v41  ;;  %2572 = vmatprep.subr.bf16.mxu1 %v3687_v42  ;;  %v3735_v41 = vld [vmem:[#allocation8 + $0x38c] ss:$16 sps:$4 sm:$0xff]   ;;  %v748_v42 = vunpack.c.h.bf16 %v3999_v29  ;;  %v3775_v29 = vld [vmem:[#allocation8 + $0x468] ss:$16 sps:$4 sm:$0xff]  }
 0x18f   :  { %v764_v49 = vadd.f32 1.0, %v748_v42  ;;  %v3792_v42 = vld [vmem:[#allocation8 + $0x4c4] ss:$16 sps:$4 sm:$0xff]  }
 0x190   :  { %2401 = vmatpush1.bf16.msra.mxu0 %v3682_v43  ;;  %2573 = vmatpush1.bf16.msra.mxu1 %v3685_v44  ;;  %v753_v43 = vadd.f32 1.0, %v737_v33  ;;  %v761_v44 = vadd.f32 1.0, %v745_v34  ;;  %v3778_v33 = vld [vmem:[#allocation8 + $0x480] ss:$16 sps:$4 sm:$0xff]   ;;  %v3781_v34 = vld [vmem:[#allocation8 + $0x488] ss:$16 sps:$4 sm:$0xff]  }
 0x191   :  { %2402 = vmatprep.subr.bf16.mxu0 %v3690_v45  ;;  %2574 = vmatprep.subr.bf16.mxu1 %v3693_v0  ;;  %v3730_v45 = vld [vmem:[#allocation8 + $0x380] ss:$16 sps:$4 sm:$0xff]   ;;  %v3733_v0 = vld [vmem:[#allocation8 + $0x388] ss:$16 sps:$4 sm:$0xff]  }
 0x192   :  { %4000 = vrcp.f32 %v753_v43  ;;  %v3795_v43 = vld [vmem:[#allocation8 + $0x4cc] ss:$16 sps:$4 sm:$0xff]  }
 0x193   :  { %4002 = vrcp.f32 %v761_v44  ;;  %v710_v44 = vsub.bf16 0, %v702_v6  ;;  %v3805_v6 = vld [vmem:[#allocation8 + $0x508] ss:$16 sps:$4 sm:$0xff]  }
 0x194   :  { %2403 = vmatpush1.bf16.msra.mxu0 %v3688_v46  ;;  %2575 = vmatpush1.bf16.msra.mxu1 %v3691_v47  ;;  %v756_v46 = vadd.f32 1.0, %v740_v38  ;;  %v3738_v47 = vld [vmem:[#allocation8 + $0x3a4] ss:$16 sps:$4 sm:$0xff]   ;;  %v3784_v38 = vld [vmem:[#allocation8 + $0x4a0] ss:$16 sps:$4 sm:$0xff]  }
 0x195   :  { %2404 = vmatprep.subr.bf16.mxu0 %v3696_v52  ;;  %2576 = vmatprep.subr.bf16.mxu1 %v3699_v53  ;;  %v3744_v52 = vld [vmem:[#allocation8 + $0x3c4] ss:$16 sps:$4 sm:$0xff]   ;;  %v3747_v53 = vld [vmem:[#allocation8 + $0x3cc] ss:$16 sps:$4 sm:$0xff]  }
 0x196   :  { %4004 = vrcp.f32 %v756_v46  ;;  %v3793_v46 = vld [vmem:[#allocation8 + $0x4c8] ss:$16 sps:$4 sm:$0xff]  }
 0x197   :  { %4006 = vrcp.f32 %v764_v49  ;;  %v733_v49 = vmul.bf16 1069105081, %v710_v44 }
 0x198   :  { %2405 = vmatpush1.bf16.msra.mxu0 %v3694_v59  ;;  %2577 = vmatpush1.bf16.msra.mxu1 %v3697_v36  ;;  %v3748_v59 = vld [vmem:[#allocation8 + $0x3e0] ss:$16 sps:$4 sm:$0xff]  }
 0x199   :  { %2406 = vmatprep.subr.bf16.mxu0 %v3702_v1  ;;  %2578 = vmatprep.subr.bf16.mxu1 %v3705_v2  ;;  %v3759_v1 = vld [vmem:[#allocation8 + $0x40c] ss:$16 sps:$4 sm:$0xff]  }
 0x19c   :  { %2407 = vmatpush1.bf16.msra.mxu0 %v3700_v8  ;;  %2579 = vmatpush1.bf16.msra.mxu1 %v3703_v15  ;;  %v4001_v58 = vpop.eup %4000  ;;  %v3754_v8 = vld [vmem:[#allocation8 + $0x400] ss:$16 sps:$4 sm:$0xff]   ;;  %v3757_v15 = vld [vmem:[#allocation8 + $0x408] ss:$16 sps:$4 sm:$0xff]  }
 0x19d   :  { %2408 = vmatprep.subr.bf16.mxu0 %v3708_v16  ;;  %2580 = vmatprep.subr.bf16.mxu1 %v3711_v18  ;;  %v4003_v36 = vpop.eup %4002  ;;  %v3762_v18 = vld [vmem:[#allocation8 + $0x424] ss:$16 sps:$4 sm:$0xff]  }
 0x19e   :  { %v785_v16 = vpack.c.bf16 %v4003_v36, %v4001_v58  ;;  %v3817_v58 = vld [vmem:[#allocation8 + $0x548] ss:$16 sps:$4 sm:$0xff]   ;;  %v3825_v36 = vld [vmem:[#allocation8 + $0x56c] ss:$16 sps:$4 sm:$0xff]  }
 0x1a0   :  { %2409 = vmatpush1.bf16.msra.mxu0 %v3706_v19  ;;  %2581 = vmatpush1.bf16.msra.mxu1 %v3709_v20  ;;  %v4005_v2 = vpop.eup %4004  ;;  %v3765_v19 = vld [vmem:[#allocation8 + $0x42c] ss:$16 sps:$4 sm:$0xff]  }
 0x1a1   :  { %2410 = vmatprep.subr.bf16.mxu0 %v3714_v21  ;;  %2582 = vmatprep.subr.bf16.mxu1 %v3717_v22  ;;  %v4007_v11 = vpop.eup %4006  ;;  %v3760_v21 = vld [vmem:[#allocation8 + $0x420] ss:$16 sps:$4 sm:$0xff]   ;;  %v3763_v22 = vld [vmem:[#allocation8 + $0x428] ss:$16 sps:$4 sm:$0xff]  }
 0x1a2   :  { %v788_v20 = vpack.c.bf16 %v4007_v11, %v4005_v2  ;;  %v3820_v2 = vld [vmem:[#allocation8 + $0x560] ss:$16 sps:$4 sm:$0xff]   ;;  %v3823_v11 = vld [vmem:[#allocation8 + $0x568] ss:$16 sps:$4 sm:$0xff]  }
 0x1a4   :  { %2411 = vmatpush1.bf16.msra.mxu0 %v3712_v23  ;;  %2583 = vmatpush1.bf16.msra.mxu1 %v3715_v24  ;;  %v3768_v23 = vld [vmem:[#allocation8 + $0x444] ss:$16 sps:$4 sm:$0xff]   ;;  %v3771_v24 = vld [vmem:[#allocation8 + $0x44c] ss:$16 sps:$4 sm:$0xff]  }
 0x1a5   :  { %2412 = vmatprep.subr.bf16.mxu0 %v3720_v25  ;;  %2584 = vmatprep.subr.bf16.mxu1 %v3723_v7  ;;  %v3766_v25 = vld [vmem:[#allocation8 + $0x440] ss:$16 sps:$4 sm:$0xff]   ;;  %v3769_v7 = vld [vmem:[#allocation8 + $0x448] ss:$16 sps:$4 sm:$0xff]  }
 0x1a8   :  { %2413 = vmatpush1.bf16.msra.mxu0 %v3718_v27  ;;  %2585 = vmatpush1.bf16.msra.mxu1 %v3721_v28  ;;  %v3777_v27 = vld [vmem:[#allocation8 + $0x46c] ss:$16 sps:$4 sm:$0xff]   ;;  %v3772_v28 = vld [vmem:[#allocation8 + $0x460] ss:$16 sps:$4 sm:$0xff]  }
 0x1a9   :  { %2414 = vmatprep.subr.bf16.mxu0 %v3726_v31  ;;  %2586 = vmatprep.subr.bf16.mxu1 %v3729_v32  ;;  %v3780_v31 = vld [vmem:[#allocation8 + $0x484] ss:$16 sps:$4 sm:$0xff]   ;;  %v3783_v32 = vld [vmem:[#allocation8 + $0x48c] ss:$16 sps:$4 sm:$0xff]  }
 0x1ac   :  { %2415 = vmatpush1.bf16.msra.mxu0 %v3724_v35  ;;  %2587 = vmatpush1.bf16.msra.mxu1 %v3727_v37  ;;  %v3786_v35 = vld [vmem:[#allocation8 + $0x4a4] ss:$16 sps:$4 sm:$0xff]   ;;  %v3789_v37 = vld [vmem:[#allocation8 + $0x4ac] ss:$16 sps:$4 sm:$0xff]  }
 0x1ad   :  { %2416 = vmatprep.subr.bf16.mxu0 %v3732_v39  ;;  %2588 = vmatprep.subr.bf16.mxu1 %v3735_v41  ;;  %v3787_v39 = vld [vmem:[#allocation8 + $0x4a8] ss:$16 sps:$4 sm:$0xff]   ;;  %v707_v41 = vsub.bf16 0, %v699_v13  ;;  %v3804_v13 = vld [vmem:[#allocation8 + $0x504] ss:$16 sps:$4 sm:$0xff]  }
 0x1b0   :  { %2417 = vmatpush1.bf16.msra.mxu0 %v3730_v45  ;;  %2589 = vmatpush1.bf16.msra.mxu1 %v3733_v0  ;;  %v724_v45 = vmul.bf16 1069105081, %v707_v41  ;;  %v3790_v0 = vld [vmem:[#allocation8 + $0x4c0] ss:$16 sps:$4 sm:$0xff]   ;;  %v3852_v41 = vld [vmem:[#allocation8 + $0x604] ss:$16 sps:$4 sm:$0xff]  }
 0x1b1   :  { %2418 = vmatprep.subr.bf16.mxu0 %v3738_v47  ;;  %2590 = vmatprep.subr.bf16.mxu1 %v3741_v48  ;;  %v3798_v47 = vld [vmem:[#allocation8 + $0x4e4] ss:$16 sps:$4 sm:$0xff]   ;;  %v3801_v48 = vld [vmem:[#allocation8 + $0x4ec] ss:$16 sps:$4 sm:$0xff]  }
 0x1b2   :  { %4008 = vpow.bf16 %v724_v45  ;;  %v3850_v45 = vld [vmem:[#allocation8 + $0x600] ss:$16 sps:$4 sm:$0xff]  }
 0x1b3   :  { %4010 = vpow.bf16 %v733_v49 }
 0x1b4   :  { %2419 = vmatpush1.bf16.msra.mxu0 %v3736_v50  ;;  %2591 = vmatpush1.bf16.msra.mxu1 %v3739_v51  ;;  %v3810_v50 = vld [vmem:[#allocation8 + $0x524] ss:$16 sps:$4 sm:$0xff]   ;;  %v3813_v51 = vld [vmem:[#allocation8 + $0x52c] ss:$16 sps:$4 sm:$0xff]  }
 0x1b5   :  { %2420 = vmatprep.subr.bf16.mxu0 %v3744_v52  ;;  %2592 = vmatprep.subr.bf16.mxu1 %v3747_v53  ;;  %v3808_v52 = vld [vmem:[#allocation8 + $0x520] ss:$16 sps:$4 sm:$0xff]   ;;  %v3811_v53 = vld [vmem:[#allocation8 + $0x528] ss:$16 sps:$4 sm:$0xff]  }
 0x1b8   :  { %2421 = vmatpush1.bf16.msra.mxu0 %v3742_v54  ;;  %2593 = vmatpush1.bf16.msra.mxu1 %v3745_v55  ;;  %v3816_v54 = vld [vmem:[#allocation8 + $0x544] ss:$16 sps:$4 sm:$0xff]   ;;  %v3819_v55 = vld [vmem:[#allocation8 + $0x54c] ss:$16 sps:$4 sm:$0xff]  }
 0x1b9   :  { %2422 = vmatprep.subr.bf16.mxu0 %v3750_v56  ;;  %2594 = vmatprep.subr.bf16.mxu1 %v3753_v57  ;;  %v3814_v57 = vld [vmem:[#allocation8 + $0x540] ss:$16 sps:$4 sm:$0xff]  }
 0x1bc   :  { %2423 = vmatpush1.bf16.msra.mxu0 %v3748_v59  ;;  %2595 = vmatpush1.bf16.msra.mxu1 %v3751_v30  ;;  %v3822_v30 = vld [vmem:[#allocation8 + $0x564] ss:$16 sps:$4 sm:$0xff]  }
 0x1bd   :  { %2435 = vmatprep.subr.bf16.mxu0 %v3756_v62  ;;  %2607 = vmatprep.subr.bf16.mxu1 %v3759_v1  ;;  %v4009_v56 = vpop.eup %4008 }
 0x1be   :  { %v4011_v59 = vpop.eup %4010  ;;  %v739_v62 = vunpack.c.l.bf16 %v4009_v56  ;;  %v747_v1 = vunpack.c.h.bf16 %v4009_v56  ;;  %v3874_v56 = vld [vmem:[#allocation8 + $0x680] ss:$16 sps:$4 sm:$0xff]  }
 0x1bf   :  { %2425 = vmatmul.mubr.bf16.vlgmr.msra.gmra.mrb[8].mxu0 %v785_v16  ;;  %2597 = vmatmul.mubr.bf16.vlgmr.msra.gmra.mrb[8].mxu1 %v785_v16  ;;  %v3831_v16 = vld [vmem:[#allocation8 + $0x58c] ss:$16 sps:$4 sm:$0xff]  }
 0x1c0   :  { %2436 = vmatpush1.bf16.msra.mxu0 %v3754_v8  ;;  %2608 = vmatpush1.bf16.msra.mxu1 %v3757_v15  ;;  %v742_v8 = vunpack.c.l.bf16 %v4011_v59  ;;  %v3828_v15 = vld [vmem:[#allocation8 + $0x584] ss:$16 sps:$4 sm:$0xff]  }
 0x1c1   :  { %2437 = vmatprep.subr.bf16.mxu0 %v3762_v18  ;;  %2609 = vmatprep.subr.bf16.mxu1 %v3765_v19  ;;  %v750_v18 = vunpack.c.h.bf16 %v4011_v59  ;;  %v755_v19 = vadd.f32 1.0, %v739_v62  ;;  %v3885_v59 = vld [vmem:[#allocation8 + $0x6ac] ss:$16 sps:$4 sm:$0xff]   ;;  %v709_v62 = vsub.bf16 0, %v701_v5  ;;  %v3898_v5 = vld [vmem:[#allocation8 + $0x700] ss:$16 sps:$4 sm:$0xff]  }
 0x1c2   :  { %2467 = vmatprep.mubr.bf16.mxu0 %v788_v20  ;;  %2639 = vmatprep.mubr.bf16.mxu1 %v788_v20  ;;  %v763_v20 = vadd.f32 1.0, %v747_v1  ;;  %v3888_v1 = vld [vmem:[#allocation8 + $0x6c4] ss:$16 sps:$4 sm:$0xff]  }
 0x1c3   :  { %4012 = vrcp.f32 %v755_v19  ;;  %v3892_v19 = vld [vmem:[#allocation8 + $0x6e0] ss:$16 sps:$4 sm:$0xff]  }
 0x1c4   :  { %2438 = vmatpush1.bf16.msra.mxu0 %v3760_v21  ;;  %2610 = vmatpush1.bf16.msra.mxu1 %v3763_v22  ;;  %v3826_v21 = vld [vmem:[#allocation8 + $0x580] ss:$16 sps:$4 sm:$0xff]   ;;  %v3829_v22 = vld [vmem:[#allocation8 + $0x588] ss:$16 sps:$4 sm:$0xff]   ;;  %4014 = vrcp.f32 %v763_v20 }
 0x1c5   :  { %2439 = vmatprep.subr.bf16.mxu0 %v3768_v23  ;;  %2611 = vmatprep.subr.bf16.mxu1 %v3771_v24  ;;  %v758_v23 = vadd.f32 1.0, %v742_v8  ;;  %v3834_v24 = vld [vmem:[#allocation8 + $0x5a4] ss:$16 sps:$4 sm:$0xff]   ;;  %v3889_v8 = vld [vmem:[#allocation8 + $0x6c8] ss:$16 sps:$4 sm:$0xff]  }
 0x1c6   :  { %v3895_v20 = vld [vmem:[#allocation8 + $0x6e8] ss:$16 sps:$4 sm:$0xff]  }
 0x1c7   :  { %4016 = vrcp.f32 %v758_v23  ;;  %v3909_v23 = vld [vmem:[#allocation8 + $0x72c] ss:$16 sps:$4 sm:$0xff]  }
 0x1c8   :  { %2440 = vmatpush1.bf16.msra.mxu0 %v3766_v25  ;;  %2612 = vmatpush1.bf16.msra.mxu1 %v3769_v7  ;;  %v3837_v25 = vld [vmem:[#allocation8 + $0x5ac] ss:$16 sps:$4 sm:$0xff]   ;;  %v766_v7 = vadd.f32 1.0, %v750_v18 }
 0x1c9   :  { %2441 = vmatprep.subr.bf16.mxu0 %v3774_v26  ;;  %2613 = vmatprep.subr.bf16.mxu1 %v3777_v27  ;;  %v3832_v26 = vld [vmem:[#allocation8 + $0x5a0] ss:$16 sps:$4 sm:$0xff]   ;;  %v3835_v27 = vld [vmem:[#allocation8 + $0x5a8] ss:$16 sps:$4 sm:$0xff]   ;;  %v3897_v18 = vld [vmem:[#allocation8 + $0x6ec] ss:$16 sps:$4 sm:$0xff]  }
 0x1ca   :  { %4018 = vrcp.f32 %v766_v7  ;;  %v3912_v7 = vld [vmem:[#allocation8 + $0x744] ss:$16 sps:$4 sm:$0xff]  }
 0x1cc   :  { %2442 = vmatpush1.bf16.msra.mxu0 %v3772_v28  ;;  %2614 = vmatpush1.bf16.msra.mxu1 %v3775_v29  ;;  %v3840_v28 = vld [vmem:[#allocation8 + $0x5c4] ss:$16 sps:$4 sm:$0xff]   ;;  %v3843_v29 = vld [vmem:[#allocation8 + $0x5cc] ss:$16 sps:$4 sm:$0xff]  }
 0x1cd   :  { %2443 = vmatprep.subr.bf16.mxu0 %v3780_v31  ;;  %2615 = vmatprep.subr.bf16.mxu1 %v3783_v32  ;;  %v3838_v31 = vld [vmem:[#allocation8 + $0x5c0] ss:$16 sps:$4 sm:$0xff]   ;;  %v3841_v32 = vld [vmem:[#allocation8 + $0x5c8] ss:$16 sps:$4 sm:$0xff]  }
 0x1d0   :  { %2444 = vmatpush1.bf16.msra.mxu0 %v3778_v33  ;;  %2616 = vmatpush1.bf16.msra.mxu1 %v3781_v34  ;;  %v3846_v33 = vld [vmem:[#allocation8 + $0x5e4] ss:$16 sps:$4 sm:$0xff]   ;;  %v3849_v34 = vld [vmem:[#allocation8 + $0x5ec] ss:$16 sps:$4 sm:$0xff]  }
 0x1d1   :  { %2445 = vmatprep.subr.bf16.mxu0 %v3786_v35  ;;  %2617 = vmatprep.subr.bf16.mxu1 %v3789_v37  ;;  %v4013_v35 = vpop.eup %4012  ;;  %v3844_v37 = vld [vmem:[#allocation8 + $0x5e0] ss:$16 sps:$4 sm:$0xff]  }
 0x1d4   :  { %2446 = vmatpush1.bf16.msra.mxu0 %v3784_v38  ;;  %2618 = vmatpush1.bf16.msra.mxu1 %v3787_v39  ;;  %v3847_v38 = vld [vmem:[#allocation8 + $0x5e8] ss:$16 sps:$4 sm:$0xff]   ;;  %v4015_v39 = vpop.eup %4014 }
 0x1d5   :  { %2447 = vmatprep.subr.bf16.mxu0 %v3792_v42  ;;  %2619 = vmatprep.subr.bf16.mxu1 %v3795_v43  ;;  %v3855_v42 = vld [vmem:[#allocation8 + $0x60c] ss:$16 sps:$4 sm:$0xff]   ;;  %v4017_v43 = vpop.eup %4016 }
 0x1d6   :  { %v4019_v44 = vpop.eup %4018 }
 0x1d7   :  { %v790_v49 = vpack.c.bf16 %v4019_v44, %v4017_v43  ;;  %v3922_v43 = vld [vmem:[#allocation8 + $0x780] ss:$16 sps:$4 sm:$0xff]   ;;  %v3925_v44 = vld [vmem:[#allocation8 + $0x788] ss:$16 sps:$4 sm:$0xff]  }
 0x1d8   :  { %2448 = vmatpush1.bf16.msra.mxu0 %v3790_v0  ;;  %2620 = vmatpush1.bf16.msra.mxu1 %v3793_v46  ;;  %v3853_v0 = vld [vmem:[#allocation8 + $0x608] ss:$16 sps:$4 sm:$0xff]   ;;  %v787_v46 = vpack.c.bf16 %v4015_v39, %v4013_v35  ;;  %v3916_v35 = vld [vmem:[#allocation8 + $0x760] ss:$16 sps:$4 sm:$0xff]   ;;  %v3927_v39 = vld [vmem:[#allocation8 + $0x78c] ss:$16 sps:$4 sm:$0xff]  }
 0x1d9   :  { %2449 = vmatprep.subr.bf16.mxu0 %v3798_v47  ;;  %2621 = vmatprep.subr.bf16.mxu1 %v3801_v48  ;;  %v3858_v47 = vld [vmem:[#allocation8 + $0x624] ss:$16 sps:$4 sm:$0xff]   ;;  %v3861_v48 = vld [vmem:[#allocation8 + $0x62c] ss:$16 sps:$4 sm:$0xff]  }
 0x1dc   :  { %2450 = vmatpush1.bf16.msra.mxu0 %v3796_v63  ;;  %2622 = vmatpush1.bf16.msra.mxu1 %v3799_v4  ;;  %v3856_v63 = vld [vmem:[#allocation8 + $0x620] ss:$16 sps:$4 sm:$0xff]   ;;  %v3859_v4 = vld [vmem:[#allocation8 + $0x628] ss:$16 sps:$4 sm:$0xff]  }
 0x1dd   :  { %2451 = vmatprep.subr.bf16.mxu0 %v3804_v13  ;;  %2623 = vmatprep.subr.bf16.mxu1 %v3807_v60  ;;  %v3864_v13 = vld [vmem:[#allocation8 + $0x644] ss:$16 sps:$4 sm:$0xff]   ;;  %v3867_v60 = vld [vmem:[#allocation8 + $0x64c] ss:$16 sps:$4 sm:$0xff]  }
 0x1e0   :  { %2452 = vmatpush1.bf16.msra.mxu0 %v3802_v3  ;;  %2624 = vmatpush1.bf16.msra.mxu1 %v3805_v6  ;;  %v3862_v3 = vld [vmem:[#allocation8 + $0x640] ss:$16 sps:$4 sm:$0xff]   ;;  %v3865_v6 = vld [vmem:[#allocation8 + $0x648] ss:$16 sps:$4 sm:$0xff]  }
 0x1e1   :  { %2453 = vmatprep.subr.bf16.mxu0 %v3810_v50  ;;  %2625 = vmatprep.subr.bf16.mxu1 %v3813_v51  ;;  %v3870_v50 = vld [vmem:[#allocation8 + $0x664] ss:$16 sps:$4 sm:$0xff]   ;;  %v3873_v51 = vld [vmem:[#allocation8 + $0x66c] ss:$16 sps:$4 sm:$0xff]  }
 0x1e4   :  { %2454 = vmatpush1.bf16.msra.mxu0 %v3808_v52  ;;  %2626 = vmatpush1.bf16.msra.mxu1 %v3811_v53  ;;  %v3868_v52 = vld [vmem:[#allocation8 + $0x660] ss:$16 sps:$4 sm:$0xff]   ;;  %v3871_v53 = vld [vmem:[#allocation8 + $0x668] ss:$16 sps:$4 sm:$0xff]  }
 0x1e5   :  { %2455 = vmatprep.subr.bf16.mxu0 %v3816_v54  ;;  %2627 = vmatprep.subr.bf16.mxu1 %v3819_v55  ;;  %v3876_v54 = vld [vmem:[#allocation8 + $0x684] ss:$16 sps:$4 sm:$0xff]   ;;  %v3879_v55 = vld [vmem:[#allocation8 + $0x68c] ss:$16 sps:$4 sm:$0xff]  }
 0x1e8   :  { %2456 = vmatpush1.bf16.msra.mxu0 %v3814_v57  ;;  %2628 = vmatpush1.bf16.msra.mxu1 %v3817_v58  ;;  %v3877_v57 = vld [vmem:[#allocation8 + $0x688] ss:$16 sps:$4 sm:$0xff]   ;;  %v3882_v58 = vld [vmem:[#allocation8 + $0x6a4] ss:$16 sps:$4 sm:$0xff]  }
 0x1e9   :  { %2457 = vmatprep.subr.bf16.mxu0 %v3822_v30  ;;  %2629 = vmatprep.subr.bf16.mxu1 %v3825_v36  ;;  %v3880_v30 = vld [vmem:[#allocation8 + $0x6a0] ss:$16 sps:$4 sm:$0xff]   ;;  %v3883_v36 = vld [vmem:[#allocation8 + $0x6a8] ss:$16 sps:$4 sm:$0xff]  }
 0x1ec   :  { %2458 = vmatpush1.bf16.msra.mxu0 %v3820_v2  ;;  %2630 = vmatpush1.bf16.msra.mxu1 %v3823_v11  ;;  %v3891_v2 = vld [vmem:[#allocation8 + $0x6cc] ss:$16 sps:$4 sm:$0xff]   ;;  %v3886_v11 = vld [vmem:[#allocation8 + $0x6c0] ss:$16 sps:$4 sm:$0xff]  }
 0x1ed   :  { %2459 = vmatprep.subr.bf16.mxu0 %v3828_v15  ;;  %2631 = vmatprep.subr.bf16.mxu1 %v3831_v16  ;;  %v730_v15 = vmul.bf16 1069105081, %v709_v62  ;;  %v3894_v16 = vld [vmem:[#allocation8 + $0x6e4] ss:$16 sps:$4 sm:$0xff]  }
 0x1ee   :  { %v3955_v62 = vld [vmem:[#allocation10 + $0xd0] sm:$0xff]  }
 0x1ef   :  { %4020 = vpow.bf16 %v730_v15  ;;  %v3960_v15 = vld [vmem:[#allocation10 + $0x18] sm:$0xff]  }
 0x1f0   :  { %2460 = vmatpush1.bf16.msra.mxu0 %v3826_v21  ;;  %2632 = vmatpush1.bf16.msra.mxu1 %v3829_v22  ;;  %v3901_v21 = vld [vmem:[#allocation8 + $0x708] ss:$16 sps:$4 sm:$0xff]   ;;  %v3906_v22 = vld [vmem:[#allocation8 + $0x724] ss:$16 sps:$4 sm:$0xff]  }
 0x1f1   :  { %2461 = vmatprep.subr.bf16.mxu0 %v3834_v24  ;;  %2633 = vmatprep.subr.bf16.mxu1 %v3837_v25  ;;  %v3904_v24 = vld [vmem:[#allocation8 + $0x720] ss:$16 sps:$4 sm:$0xff]   ;;  %v3907_v25 = vld [vmem:[#allocation8 + $0x728] ss:$16 sps:$4 sm:$0xff]  }
 0x1f4   :  { %2462 = vmatpush1.bf16.msra.mxu0 %v3832_v26  ;;  %2634 = vmatpush1.bf16.msra.mxu1 %v3835_v27  ;;  %v3915_v26 = vld [vmem:[#allocation8 + $0x74c] ss:$16 sps:$4 sm:$0xff]  }
 0x1f5   :  { %2463 = vmatprep.subr.bf16.mxu0 %v3840_v28  ;;  %2635 = vmatprep.subr.bf16.mxu1 %v3843_v29  ;;  %v3910_v28 = vld [vmem:[#allocation8 + $0x740] ss:$16 sps:$4 sm:$0xff]   ;;  %v3913_v29 = vld [vmem:[#allocation8 + $0x748] ss:$16 sps:$4 sm:$0xff]  }
 0x1f8   :  { %2464 = vmatpush1.bf16.msra.mxu0 %v3838_v31  ;;  %2636 = vmatpush1.bf16.msra.mxu1 %v3841_v32  ;;  %v3918_v31 = vld [vmem:[#allocation8 + $0x764] ss:$16 sps:$4 sm:$0xff]   ;;  %v3921_v32 = vld [vmem:[#allocation8 + $0x76c] ss:$16 sps:$4 sm:$0xff]  }
 0x1f9   :  { %2465 = vmatprep.subr.bf16.mxu0 %v3846_v33  ;;  %2637 = vmatprep.subr.bf16.mxu1 %v3849_v34 }
 0x1fa   :  { %v4021_v27 = vpop.eup %4020 }
 0x1fb   :  { %v741_v33 = vunpack.c.l.bf16 %v4021_v27  ;;  %v749_v34 = vunpack.c.h.bf16 %v4021_v27  ;;  %v3975_v27 = vld [vmem:[#allocation10 + $0xf8] sm:$0xff]  }
 0x1fc   :  { %2466 = vmatpush1.bf16.msra.mxu0 %v3844_v37  ;;  %2638 = vmatpush1.bf16.msra.mxu1 %v3847_v38  ;;  %v3919_v37 = vld [vmem:[#allocation8 + $0x768] ss:$16 sps:$4 sm:$0xff]   ;;  %v3924_v38 = vld [vmem:[#allocation8 + $0x784] ss:$16 sps:$4 sm:$0xff]  }
 0x1fd   :  { %2478 = vmatprep.subr.bf16.mxu0 %v3852_v41  ;;  %2650 = vmatprep.subr.bf16.mxu1 %v3855_v42  ;;  %v757_v41 = vadd.f32 1.0, %v741_v33  ;;  %v765_v42 = vadd.f32 1.0, %v749_v34 }
 0x1ff   :  { %2468 = vmatmul.mubr.bf16.vlgmr.msra.gmra.mrb[8].mxu0 %v787_v46  ;;  %2640 = vmatmul.mubr.bf16.vlgmr.msra.gmra.mrb[8].mxu1 %v787_v46  ;;  %4022 = vrcp.f32 %v757_v41  ;;  %v3928_v46 = vld [vmem:[#allocation8 + $0x7a0] ss:$16 sps:$4 sm:$0xff]  }
 0x200   :  { %2479 = vmatpush1.bf16.msra.mxu0 %v3850_v45  ;;  %2651 = vmatpush1.bf16.msra.mxu1 %v3853_v0  ;;  %v3930_v45 = vld [vmem:[#allocation8 + $0x7a4] ss:$16 sps:$4 sm:$0xff]   ;;  %v3933_v0 = vld [vmem:[#allocation8 + $0x7ac] ss:$16 sps:$4 sm:$0xff]   ;;  %4024 = vrcp.f32 %v765_v42 }
 0x201   :  { %2480 = vmatprep.subr.bf16.mxu0 %v3858_v47  ;;  %2652 = vmatprep.subr.bf16.mxu1 %v3861_v48  ;;  %v3931_v47 = vld [vmem:[#allocation8 + $0x7a8] ss:$16 sps:$4 sm:$0xff]   ;;  %v3936_v48 = vld [vmem:[#allocation8 + $0x7c4] ss:$16 sps:$4 sm:$0xff]  }
 0x202   :  { %2510 = vmatprep.mubr.bf16.mxu0 %v790_v49  ;;  %2682 = vmatprep.mubr.bf16.mxu1 %v790_v49  ;;  %v3939_v49 = vld [vmem:[#allocation8 + $0x7cc] ss:$16 sps:$4 sm:$0xff]  }
 0x204   :  { %2481 = vmatpush1.bf16.msra.mxu0 %v3856_v63  ;;  %2653 = vmatpush1.bf16.msra.mxu1 %v3859_v4  ;;  %v3934_v63 = vld [vmem:[#allocation8 + $0x7c0] ss:$16 sps:$4 sm:$0xff]   ;;  %v3937_v4 = vld [vmem:[#allocation8 + $0x7c8] ss:$16 sps:$4 sm:$0xff]  }
 0x205   :  { %2482 = vmatprep.subr.bf16.mxu0 %v3864_v13  ;;  %2654 = vmatprep.subr.bf16.mxu1 %v3867_v60  ;;  %v3942_v13 = vld [vmem:[#allocation8 + $0x7e4] ss:$16 sps:$4 sm:$0xff]   ;;  %v3945_v60 = vld [vmem:[#allocation8 + $0x7ec] ss:$16 sps:$4 sm:$0xff]  }
 0x208   :  { %2483 = vmatpush1.bf16.msra.mxu0 %v3862_v3  ;;  %2655 = vmatpush1.bf16.msra.mxu1 %v3865_v6  ;;  %v3940_v3 = vld [vmem:[#allocation8 + $0x7e0] ss:$16 sps:$4 sm:$0xff]   ;;  %v3943_v6 = vld [vmem:[#allocation8 + $0x7e8] ss:$16 sps:$4 sm:$0xff]  }
 0x209   :  { %2484 = vmatprep.subr.bf16.mxu0 %v3870_v50  ;;  %2656 = vmatprep.subr.bf16.mxu1 %v3873_v51  ;;  %v4023_v50 = vpop.eup %4022 }
 0x20a   :  { %v4025_v51 = vpop.eup %4024 }
 0x20c   :  { %2485 = vmatpush1.bf16.msra.mxu0 %v3868_v52  ;;  %2657 = vmatpush1.bf16.msra.mxu1 %v3871_v53  ;;  %v789_v52 = vpack.c.bf16 %v4025_v51, %v4023_v50  ;;  %v3946_v53 = vld [vmem:[#allocation10 + $0x40] sm:$0xff]  }
 0x20d   :  { %2486 = vmatprep.subr.bf16.mxu0 %v3876_v54  ;;  %2658 = vmatprep.subr.bf16.mxu1 %v3879_v55  ;;  %v3947_v54 = vld [vmem:[#allocation10 + $0xc0] sm:$0xff]  }
 0x20e   :  { %v3948_v55 = vld [vmem:[#allocation10] sm:$0xff]  }
 0x210   :  { %2487 = vmatpush1.bf16.msra.mxu0 %v3874_v56  ;;  %2659 = vmatpush1.bf16.msra.mxu1 %v3877_v57  ;;  %v3949_v56 = vld [vmem:[#allocation10 + $0x80] sm:$0xff]   ;;  %v3950_v57 = vld [vmem:[#allocation10 + $0x48] sm:$0xff]  }
 0x211   :  { %2488 = vmatprep.subr.bf16.mxu0 %v3882_v58  ;;  %2660 = vmatprep.subr.bf16.mxu1 %v3885_v59  ;;  %v3951_v58 = vld [vmem:[#allocation10 + $0xc8] sm:$0xff]  }
 0x212   :  { %v3952_v59 = vld [vmem:[#allocation10 + $0x8] sm:$0xff]  }
 0x214   :  { %2489 = vmatpush1.bf16.msra.mxu0 %v3880_v30  ;;  %2661 = vmatpush1.bf16.msra.mxu1 %v3883_v36  ;;  %v3953_v30 = vld [vmem:[#allocation10 + $0x88] sm:$0xff]   ;;  %v3954_v36 = vld [vmem:[#allocation10 + $0x50] sm:$0xff]  }
 0x215   :  { %2490 = vmatprep.subr.bf16.mxu0 %v3888_v1  ;;  %2662 = vmatprep.subr.bf16.mxu1 %v3891_v2  ;;  %v3956_v1 = vld [vmem:[#allocation10 + $0x10] sm:$0xff]  }
 0x216   :  { %v3957_v2 = vld [vmem:[#allocation10 + $0x90] sm:$0xff]  }
 0x218   :  { %2491 = vmatpush1.bf16.msra.mxu0 %v3886_v11  ;;  %2663 = vmatpush1.bf16.msra.mxu1 %v3889_v8  ;;  %v3958_v11 = vld [vmem:[#allocation10 + $0x58] sm:$0xff]  }
 0x219   :  { %2492 = vmatprep.subr.bf16.mxu0 %v3894_v16  ;;  %2664 = vmatprep.subr.bf16.mxu1 %v3897_v18  ;;  %v3959_v8 = vld [vmem:[#allocation10 + $0xd8] sm:$0xff]   ;;  %v3962_v18 = vld [vmem:[#allocation10 + $0x60] sm:$0xff]  }
 0x21a   :  { %v3961_v16 = vld [vmem:[#allocation10 + $0x98] sm:$0xff]  }
 0x21c   :  { %2493 = vmatpush1.bf16.msra.mxu0 %v3892_v19  ;;  %2665 = vmatpush1.bf16.msra.mxu1 %v3895_v20  ;;  %v3963_v19 = vld [vmem:[#allocation10 + $0xe0] sm:$0xff]  }
 0x21d   :  { %2494 = vmatprep.subr.bf16.mxu0 %v3900_v40  ;;  %2666 = vmatprep.subr.bf16.mxu1 %v3903_v61  ;;  %v3964_v20 = vld [vmem:[#allocation10 + $0x20] sm:$0xff]   ;;  %v3966_v61 = vld [vmem:[#allocation10 + $0x68] sm:$0xff]  }
 0x21e   :  { %v3965_v40 = vld [vmem:[#allocation10 + $0xa0] sm:$0xff]  }
 0x220   :  { %2495 = vmatpush1.bf16.msra.mxu0 %v3898_v5  ;;  %2667 = vmatpush1.bf16.msra.mxu1 %v3901_v21  ;;  %v3967_v5 = vld [vmem:[#allocation10 + $0xe8] sm:$0xff]  }
 0x221   :  { %2496 = vmatprep.subr.bf16.mxu0 %v3906_v22  ;;  %2668 = vmatprep.subr.bf16.mxu1 %v3909_v23  ;;  %v3968_v21 = vld [vmem:[#allocation10 + $0x28] sm:$0xff]   ;;  %v3970_v23 = vld [vmem:[#allocation10 + $0x70] sm:$0xff]  }
 0x222   :  { %v3969_v22 = vld [vmem:[#allocation10 + $0xa8] sm:$0xff]  }
 0x224   :  { %2497 = vmatpush1.bf16.msra.mxu0 %v3904_v24  ;;  %2669 = vmatpush1.bf16.msra.mxu1 %v3907_v25  ;;  %v3971_v24 = vld [vmem:[#allocation10 + $0xf0] sm:$0xff]  }
 0x225   :  { %2498 = vmatprep.subr.bf16.mxu0 %v3912_v7  ;;  %2670 = vmatprep.subr.bf16.mxu1 %v3915_v26  ;;  %v3972_v25 = vld [vmem:[#allocation10 + $0x30] sm:$0xff]   ;;  %v3974_v26 = vld [vmem:[#allocation10 + $0x78] sm:$0xff]  }
 0x226   :  { %v3973_v7 = vld [vmem:[#allocation10 + $0xb0] sm:$0xff]  }
 0x228   :  { %2499 = vmatpush1.bf16.msra.mxu0 %v3910_v28  ;;  %2671 = vmatpush1.bf16.msra.mxu1 %v3913_v29  ;;  %v3976_v28 = vld [vmem:[#allocation10 + $0x38] sm:$0xff]  }
 0x229   :  { %2500 = vmatprep.subr.bf16.mxu0 %v3918_v31  ;;  %2672 = vmatprep.subr.bf16.mxu1 %v3921_v32  ;;  %v3977_v29 = vld [vmem:[#allocation10 + $0xb8] sm:$0xff]   ;;  %v1047_v31 = vld [vmem:[%s4427_s4] sm:$0xf] }
 0x22a   :  { %v1052_v32 = vrot.slane %v1047_v31, %v165_v10  ;;  %v1060_v33 = vrot.slane %v1047_v31, %v173_v14 }
 0x22c   :  { %2501 = vmatpush1.bf16.msra.mxu0 %v3916_v35  ;;  %2673 = vmatpush1.bf16.msra.mxu1 %v3919_v37  ;;  %v1056_v37 = vrot.slane %v1047_v31, %v169_v12 }
 0x22d   :  { %2502 = vmatprep.subr.bf16.mxu0 %v3924_v38  ;;  %2674 = vmatprep.subr.bf16.mxu1 %v3927_v39  ;;  %v1064_v38 = vrot.slane %v1047_v31, %v177_v17 }
 0x230   :  { %2503 = vmatpush1.bf16.msra.mxu0 %v3922_v43  ;;  %2675 = vmatpush1.bf16.msra.mxu1 %v3925_v44 }
 0x231   :  { %2504 = vmatprep.subr.bf16.mxu0 %v3930_v45  ;;  %2676 = vmatprep.subr.bf16.mxu1 %v3933_v0 }
 0x234   :  { %2505 = vmatpush1.bf16.msra.mxu0 %v3928_v46  ;;  %2677 = vmatpush1.bf16.msra.mxu1 %v3931_v47 }
 0x235   :  { %2506 = vmatprep.subr.bf16.mxu0 %v3936_v48  ;;  %2678 = vmatprep.subr.bf16.mxu1 %v3939_v49 }
 0x238   :  { %2507 = vmatpush1.bf16.msra.mxu0 %v3934_v63  ;;  %2679 = vmatpush1.bf16.msra.mxu1 %v3937_v4 }
 0x239   :  { %2508 = vmatprep.subr.bf16.mxu0 %v3942_v13  ;;  %2680 = vmatprep.subr.bf16.mxu1 %v3945_v60 }
 0x23c   :  { %2509 = vmatpush1.bf16.msra.mxu0 %v3940_v3  ;;  %2681 = vmatpush1.bf16.msra.mxu1 %v3943_v6 }
 0x23d   :  { %3471 = vmatprep.subr.bf16.mxu0 %v3946_v53  ;;  %3493 = vmatprep.subr.bf16.mxu1 %v3947_v54 }
 0x23f   :  { %2511 = vmatmul.mubr.bf16.vlgmr.msra.gmra.mrb[8].mxu0 %v789_v52  ;;  %2683 = vmatmul.mubr.bf16.vlgmr.msra.gmra.mrb[8].mxu1 %v789_v52 }
 0x240   :  { %3472 = vmatpush3.bf16.msra.mxu0 %v3948_v55  ;;  %3494 = vmatpush3.bf16.msra.mxu1 %v3949_v56 }
 0x241   :  { %3473 = vmatprep.subr.bf16.mxu0 %v3950_v57  ;;  %3495 = vmatprep.subr.bf16.mxu1 %v3951_v58 }
 0x244   :  { %3474 = vmatpush3.bf16.msra.mxu0 %v3952_v59  ;;  %3496 = vmatpush3.bf16.msra.mxu1 %v3953_v30 }
 0x245   :  { %3475 = vmatprep.subr.bf16.mxu0 %v3954_v36  ;;  %3497 = vmatprep.subr.bf16.mxu1 %v3955_v62 }
 0x248   :  { %3476 = vmatpush3.bf16.msra.mxu0 %v3956_v1  ;;  %3498 = vmatpush3.bf16.msra.mxu1 %v3957_v2 }
 0x249   :  { %3477 = vmatprep.subr.bf16.mxu0 %v3958_v11  ;;  %3499 = vmatprep.subr.bf16.mxu1 %v3959_v8 }
 0x24c   :  { %3478 = vmatpush3.bf16.msra.mxu0 %v3960_v15  ;;  %3500 = vmatpush3.bf16.msra.mxu1 %v3961_v16 }
 0x24d   :  { %3479 = vmatprep.subr.bf16.mxu0 %v3962_v18  ;;  %3501 = vmatprep.subr.bf16.mxu1 %v3963_v19 }
 0x250   :  { %3480 = vmatpush3.bf16.msra.mxu0 %v3964_v20  ;;  %3502 = vmatpush3.bf16.msra.mxu1 %v3965_v40 }
 0x251   :  { %3481 = vmatprep.subr.bf16.mxu0 %v3966_v61  ;;  %3503 = vmatprep.subr.bf16.mxu1 %v3967_v5 }
 0x254   :  { %3482 = vmatpush3.bf16.msra.mxu0 %v3968_v21  ;;  %3504 = vmatpush3.bf16.msra.mxu1 %v3969_v22 }
 0x255   :  { %3483 = vmatprep.subr.bf16.mxu0 %v3970_v23  ;;  %3505 = vmatprep.subr.bf16.mxu1 %v3971_v24 }
 0x258   :  { %3484 = vmatpush3.bf16.msra.mxu0 %v3972_v25  ;;  %3506 = vmatpush3.bf16.msra.mxu1 %v3973_v7 }
 0x259   :  { %3485 = vmatprep.subr.bf16.mxu0 %v3974_v26  ;;  %3507 = vmatprep.subr.bf16.mxu1 %v3975_v27 }
 0x25c   :  { %3486 = vmatpush3.bf16.msra.mxu0 %v3976_v28  ;;  %3508 = vmatpush3.bf16.msra.mxu1 %v3977_v29 }
 0x312   :  { %v2512_v34 = vpop.f32.mrb[8].mxu0  ;;  %v2684_v35 = vpop.f32.mrb[8].mxu1 }
 0x313   :  { %v2514_v39 = vpop.f32.mrb[9].mxu0  ;;  %v2686_v41 = vpop.f32.mrb[9].mxu1  ;;  %v3515_v44 = vadd.f32 %v2512_v34, %v1052_v32  ;;  %v3519_v45 = vadd.f32 %v2684_v35, %v1060_v33 }
 0x314   :  { %v2516_v42 = vpop.f32.mrb[10].mxu0  ;;  %v2688_v43 = vpop.f32.mrb[10].mxu1  ;;  %v3516_v48 = vadd.f32 %v2514_v39, %v1056_v37  ;;  %v3520_v14 = vadd.f32 %v2686_v41, %v1064_v38 }
 0x315   :  { %v3517_v0 = vadd.f32 %v2516_v42, %v1052_v32  ;;  %v3521_v46 = vadd.f32 %v2688_v43, %v1060_v33  ;;  %v2518_v10 = vpop.f32.mrb[11].mxu0  ;;  %v2690_v47 = vpop.f32.mrb[11].mxu1  ;;  %v3438_v33 = vld [vmem:[%s4429_s6] ss:$0 sm:$0xff]  ;;  %s4210_s6 = smov [#allocation11]  }
 0x316   :  { %v3518_v49 = vadd.f32 %v2518_v10, %v1056_v37  ;;  %v3522_v63 = vadd.f32 %v2690_v47, %v1064_v38  ;;  %s3104_s21 = sshll.u32 %s4210_s6, 4  ;;  %s3105_s21 = int_to_ptr.vmem [resolvable:$true] %s3104_s21 }
 0x317   :  { %v2693_v4 = vpack.c.bf16 %v3517_v0, %v3515_v44  ;;  %v2695_v13 = vpack.c.bf16 %v3521_v46, %v3519_v45  ;;  %s4166_s22 = scalar_lea.vmem %s3105_s21, 256  ;;  %p4171_p13 = scmp.lt.s32.totalorder %s3105_s21, %s3105_s21 }
 0x318   :  { %v2694_v12 = vpack.c.bf16 %v3518_v49, %v3516_v48  ;;  %v2696_v60 = vpack.c.bf16 %v3522_v63, %v3520_v14  ;;  %p4167_p12 = scmp.ne.s32.totalorder %s3105_s21, %s4166_s22  ;;  %p4172_p0 = scmp.lt.s32.totalorder %s4166_s22, %s4166_s22 }
 0x319   :  { %v2697_v9 = vsub.bf16 0, %v2693_v4  ;;  %v2699_v17 = vsub.bf16 0, %v2695_v13 }
 0x31a   :  { %v2698_v3 = vsub.bf16 0, %v2694_v12  ;;  %v2700_v6 = vsub.bf16 0, %v2696_v60  ;;  %p4173_p1 = por %p4172_p0, %p4171_p13 }
 0x31b   :  { %v2702_v50 = vmul.bf16 1069105081, %v2697_v9  ;;  %v2708_v51 = vmul.bf16 1069105081, %v2699_v17 }
 0x31c   :  { %v2705_v52 = vmul.bf16 1069105081, %v2698_v3  ;;  %v2711_v53 = vmul.bf16 1069105081, %v2700_v6  ;;  %p4174_p2 = pnand %p4173_p1, %p4167_p12 }
 0x31d   :  { %4026 = vpow.bf16 %v2702_v50 }
 0x31e   :  { %4028 = vpow.bf16 %v2708_v51 }
 0x31f   :  { %4030 = vpow.bf16 %v2705_v52 }
 0x320   :  { %4032 = vpow.bf16 %v2711_v53 }
 0x328   :  { %v4027_v54 = vpop.eup %4026 }
 0x329   :  { %v4029_v55 = vpop.eup %4028  ;;  %v2713_v56 = vunpack.c.l.bf16 %v4027_v54  ;;  %v2717_v57 = vunpack.c.h.bf16 %v4027_v54 }
 0x32a   :  { %v4031_v58 = vpop.eup %4030  ;;  %v2715_v59 = vunpack.c.l.bf16 %v4029_v55  ;;  %v2719_v30 = vunpack.c.h.bf16 %v4029_v55 }
 0x32b   :  { %v4033_v36 = vpop.eup %4032  ;;  %v2721_v62 = vadd.f32 1.0, %v2713_v56  ;;  %v2725_v1 = vadd.f32 1.0, %v2717_v57  ;;  %v2714_v2 = vunpack.c.l.bf16 %v4031_v58  ;;  %v2718_v11 = vunpack.c.h.bf16 %v4031_v58 }
 0x32c   :  { %v2723_v8 = vadd.f32 1.0, %v2715_v59  ;;  %v2727_v15 = vadd.f32 1.0, %v2719_v30  ;;  %v2716_v16 = vunpack.c.l.bf16 %v4033_v36  ;;  %v2720_v18 = vunpack.c.h.bf16 %v4033_v36 }
 0x32d   :  { %4034 = vrcp.f32 %v2721_v62  ;;  %v2722_v19 = vadd.f32 1.0, %v2714_v2  ;;  %v2726_v20 = vadd.f32 1.0, %v2718_v11 }
 0x32e   :  { %4036 = vrcp.f32 %v2725_v1  ;;  %v2724_v40 = vadd.f32 1.0, %v2716_v16  ;;  %v2728_v61 = vadd.f32 1.0, %v2720_v18 }
 0x32f   :  { %4038 = vrcp.f32 %v2723_v8 }
 0x330   :  { %4040 = vrcp.f32 %v2727_v15 }
 0x331   :  { %4042 = vrcp.f32 %v2722_v19 }
 0x332   :  { %4044 = vrcp.f32 %v2726_v20 }
 0x333   :  { %4046 = vrcp.f32 %v2724_v40 }
 0x334   :  { %4048 = vrcp.f32 %v2728_v61 }
 0x337   :  { %v4035_v5 = vpop.eup %4034 }
 0x338   :  { %v4037_v21 = vpop.eup %4036 }
 0x339   :  { %v4039_v22 = vpop.eup %4038  ;;  %v2737_v28 = vpack.c.bf16 %v4037_v21, %v4035_v5 }
 0x33a   :  { %v4041_v23 = vpop.eup %4040 }
 0x33b   :  { %v4043_v24 = vpop.eup %4042  ;;  %v2739_v31 = vpack.c.bf16 %v4041_v23, %v4039_v22 }
 0x33c   :  { %v4045_v25 = vpop.eup %4044 }
 0x33d   :  { %v4047_v7 = vpop.eup %4046  ;;  %v2738_v26 = vpack.c.bf16 %v4045_v25, %v4043_v24 }
 0x33e   :  { %v4049_v27 = vpop.eup %4048 }
 0x33f   :  { %3036 = vmatprep.mubr.bf16.mxu0 %v2738_v26  ;;  %v2740_v29 = vpack.c.bf16 %v4049_v27, %v4047_v7 }
 0x340   :  { %3037 = vmatmul.mubr.bf16.vlgmr.msra.gmra.mrb[12].mxu0 %v2737_v28 }
 0x341   :  { %3077 = vmatprep.mubr.bf16.mxu1 %v2740_v29 }
 0x342   :  { %3078 = vmatmul.mubr.bf16.vlgmr.msra.gmra.mrb[12].mxu1 %v2739_v31 }
 0x413   :  { %v3487_v32 = vpop.f32.mrb[12].mxu0 }
 0x414   :  { %v3488_v34 = vpop.f32.mrb[13].mxu0 }
 0x415   :  { %v3509_v35 = vpop.f32.mrb[12].mxu1  ;;  %v3489_v37 = vadd.f32 %v3488_v34, %v3487_v32  ;;  %v3490_v38 = vpop.f32.mrb[14].mxu0 }
 0x416   :  { %v3510_v39 = vpop.f32.mrb[13].mxu1  ;;  %v3491_v41 = vpop.f32.mrb[15].mxu0 }
 0x417   :  { %v3039_v42 = vadd.f32 %v3489_v37, %v3438_v33  ;;  %v3511_v43 = vadd.f32 %v3510_v39, %v3509_v35  ;;  %v3512_v44 = vpop.f32.mrb[14].mxu1  ;;  %v3492_v45 = vadd.f32 %v3491_v41, %v3490_v38 }
 0x418   :  { %v3513_v0 = vpop.f32.mrb[15].mxu1 }
 0x419   :  { %v3080_v46 = vadd.f32 %v3511_v43, %v3039_v42  ;;  %v3042_v10 = vadd.f32 %v3492_v45, %v3438_v33  ;;  %v3514_v47 = vadd.f32 %v3513_v0, %v3512_v44 }
 0x41b   :  { %v3083_v48 = vadd.f32 %v3514_v47, %v3042_v10 }
 0x41d   :  { %v3086_v14 = vpack.c.bf16 %v3083_v48, %v3080_v46 }
 0x41f   :  { %v3087_v49 = vsub.bf16 0, %v3086_v14 }
 0x421   :  { %v3089_v63 = vmul.bf16 1069105081, %v3087_v49 }
 0x423   :  { %4050 = vpow.bf16 %v3089_v63 }
 0x42e   :  { %v4051_v4 = vpop.eup %4050 }
 0x42f   :  { %v3091_v13 = vunpack.c.l.bf16 %v4051_v4  ;;  %v3092_v12 = vunpack.c.h.bf16 %v4051_v4 }
 0x431   :  { %v3093_v60 = vadd.f32 1.0, %v3091_v13  ;;  %v3094_v9 = vadd.f32 1.0, %v3092_v12 }
 0x433   :  { %4052 = vrcp.f32 %v3093_v60 }
 0x434   :  { %4054 = vrcp.f32 %v3094_v9 }
 0x43d   :  { %v4053_v17 = vpop.eup %4052 }
 0x43e   :  { %v4055_v3 = vpop.eup %4054  ;;  %3097 = vst [vmem:[#allocation11] sm:$0xff] %v4053_v17 }
 0x43f   :  { %3098 = vst [vmem:[#allocation11 + $0x8] sm:$0xff] %v4055_v3 }
 0x440   :  { %4177 = shalt.err (!%p4174_p2)
}
 0x441   :  { %s4178_s1 = scalar_lea.hbm %s4430_s7, 256 }
 0x442   :  { %p4179_p3 = scmp.ne.s32.totalorder %s4430_s7, %s4178_s1  ;;  %p4182_p4 = scmp.lt.u32.totalorder %s4178_s1, %s4430_s7 }
 0x444   :  { %p4184_p5 = pnand %p4182_p4, %p4179_p3 }
 0x446   :  { %4187 = shalt.err (!%p4184_p5)
}
 0x447   :  { %3110 = dma.vmem_to_hbm [thread:$0]  %s3105_s21, 256, %s4430_s7, [#allocation4], %s4203_s3, %s4203_s3, %s4204_s15  }
 0x448   :  { %4194 = dma.done.wait [#allocation4], 256  }
 0x449   :  { %4195 = vsyncadd [#allocation4], 4294967040 }
 0x44a   :  { %3114 = vsyncpa [#allocation3], 1 }
 0x44b   :  { %3115 = vsyncpa [#allocation6], 1 }
 0x44c   :  { %3116 = vsyncpa [#allocation9], 1 }
 0x44d   :  { %3117 = vsyncpa [#allocation4], 1 }

</bundles_post_ra>
